<compile_context>
chip_gen: v7x
topology: tpu7x:2x2x1
jax: 0.10.0
libtpu: 0.0.40
codegen_flags: <defaults>
</compile_context>

<pallas_src>
import jax
import jax.numpy as jnp
import numpy as np
from jax.experimental import pallas as pl
from jax.experimental.pallas import tpu as pltpu


def rcnn_kernel(emb_ref, wih_ref, whh_f_ref, whh_b_ref, b_ref,
                convw_ref, convb_ref, fcw_ref, fcb_ref,
                out_ref, comb_ref):
    f32 = jnp.float32
    bf16 = jnp.bfloat16

    R, E = emb_ref.shape                 # R = T * Bt rows, time-major (row = t*Bt + b)
    H = whh_f_ref.shape[0]               # whh_T has shape (H, 4H)
    Bt = out_ref.shape[0]
    T = R // Bt

    # combined scratch = [ emb | h_fwd | h_bwd | zero pad ], lane-dense (C padded to 128).
    comb_ref[...] = jnp.zeros_like(comb_ref)
    emb = emb_ref[...]                   # (R, E) f32
    comb_ref[:, 0:E] = emb

    # LSTM input projection for BOTH directions, hoisted out of the recurrence,
    # with (b_ih + b_hh) folded in once (no per-step bias broadcast).
    gx = jnp.dot(emb.astype(bf16), wih_ref[...],
                 preferred_element_type=f32) + b_ref[...]        # (R, 8H) f32

    whh_f = whh_f_ref[...]               # (H, 4H) bf16
    whh_b = whh_b_ref[...]

    def lstm_cell(gates, c):             # PyTorch gate order (i, f, g, o); f32 math
        i = jax.nn.sigmoid(gates[:, 0 * H:1 * H])
        f = jax.nn.sigmoid(gates[:, 1 * H:2 * H])
        g = jnp.tanh(gates[:, 2 * H:3 * H])
        o = jax.nn.sigmoid(gates[:, 3 * H:4 * H])
        c = f * c + i * g
        return o * jnp.tanh(c), c

    h_f = jnp.zeros((Bt, H), f32); c_f = jnp.zeros((Bt, H), f32)
    h_b = jnp.zeros((Bt, H), f32); c_b = jnp.zeros((Bt, H), f32)
    for s in range(T):                   # fused fwd/bwd recurrence (static unroll, T small)
        tf = s
        tb = T - 1 - s
        g_f = gx[tf * Bt:(tf + 1) * Bt, 0:4 * H] + jnp.dot(
            h_f.astype(bf16), whh_f, preferred_element_type=f32)
        g_b = gx[tb * Bt:(tb + 1) * Bt, 4 * H:8 * H] + jnp.dot(
            h_b.astype(bf16), whh_b, preferred_element_type=f32)
        h_f, c_f = lstm_cell(g_f, c_f)
        h_b, c_b = lstm_cell(g_b, c_b)
        comb_ref[tf * Bt:(tf + 1) * Bt, E:E + H] = h_f
        comb_ref[tb * Bt:(tb + 1) * Bt, E + H:E + 2 * H] = h_b

    # Conv1d(C -> O, kernel=3, padding=1) + ReLU as three matmuls on the combined
    # scratch; +/-1 time shifts via pltpu.roll on the time-major row axis + edge masks.
    comb = comb_ref[...]                                         # (R, C_pad) f32
    row = jax.lax.broadcasted_iota(jnp.int32, (R, 1), 0)
    prev = jnp.where(row >= Bt, pltpu.roll(comb, shift=Bt, axis=0), 0.0)        # x_{t-1}
    nxt = jnp.where(row < R - Bt, pltpu.roll(comb, shift=R - Bt, axis=0), 0.0)  # x_{t+1}
    convw = convw_ref[...]                                       # (3, C_pad, O) bf16
    acc = jnp.dot(prev.astype(bf16), convw[0], preferred_element_type=f32)
    acc = acc + jnp.dot(comb.astype(bf16), convw[1], preferred_element_type=f32)
    acc = acc + jnp.dot(nxt.astype(bf16), convw[2], preferred_element_type=f32)
    conv = jnp.maximum(acc + convb_ref[...], 0.0)                # (R, O) f32

    # max_pool1d over the full time axis -> (Bt, O)
    pooled = conv[0:Bt, :]
    for t in range(1, T):
        pooled = jnp.maximum(pooled, conv[t * Bt:(t + 1) * Bt, :])

    # TODO(synk): nn.Dropout is identity in eval mode; training-mode RNG mask omitted.
    # FC output is lane-padded to 128 so this store is an unmasked, full-width vst.
    logits = jnp.dot(pooled, fcw_ref[...], preferred_element_type=f32) + fcb_ref[...]
    out_ref[...] = logits.astype(out_ref.dtype)


def rcnn_forward(x_tokens, params):
    # Embedding lookup (glue, plain JAX gather).
    emb = jnp.take(params["embedding"], x_tokens, axis=0).astype(jnp.float32)  # (B, T, E)
    B, T, E = emb.shape
    H = params["w_hh_f"].shape[1]
    O = params["conv_w"].shape[0]
    nc = params["fc_w"].shape[0]
    C = E + 2 * H
    C_pad = ((C + 127) // 128) * 128
    NC_pad = ((nc + 127) // 128) * 128          # lane-dense output store

    # Batch tile (must divide B); whole batch at toy sizes.
    TB = min(B, 8)
    while B % TB:
        TB -= 1
    n_tiles = B // TB
    R = T * TB

    # Per-tile time-major rows: row = t*TB + b_local.
    emb_tiles = (emb.reshape(n_tiles, TB, T, E)
                    .transpose(0, 2, 1, 3)
                    .reshape(n_tiles, R, E))

    # Weight prep: transpose once, concat both LSTM directions, bf16 MXU operands.
    wih_cat = jnp.concatenate([params["w_ih_f"].T, params["w_ih_b"].T],
                              axis=1).astype(jnp.bfloat16)                  # (E, 8H)
    whh_f = params["w_hh_f"].T.astype(jnp.bfloat16)                         # (H, 4H)
    whh_b = params["w_hh_b"].T.astype(jnp.bfloat16)
    b_cat = jnp.concatenate([params["b_ih_f"] + params["b_hh_f"],
                             params["b_ih_b"] + params["b_hh_b"]]
                            ).reshape(1, 8 * H).astype(jnp.float32)         # (1, 8H)
    convw = jnp.transpose(params["conv_w"], (2, 1, 0))                      # (3, C, O)
    convw = jnp.pad(convw, ((0, 0), (0, C_pad - C), (0, 0))).astype(jnp.bfloat16)
    convb = params["conv_b"].reshape(1, O).astype(jnp.float32)
    fcw = jnp.pad(params["fc_w"].T, ((0, 0), (0, NC_pad - nc))
                  ).astype(jnp.float32)                                     # (O, NC_pad)
    fcb = jnp.pad(params["fc_b"], ((0, NC_pad - nc),)).reshape(1, NC_pad
                  ).astype(jnp.float32)

    def fullspec(shape):
        nd = len(shape)
        return pl.BlockSpec(shape, lambda i, _nd=nd: (0,) * _nd)

    in_specs = [
        pl.BlockSpec((None, R, E), lambda i: (i, 0, 0)),   # emb batch tile
        fullspec(wih_cat.shape),
        fullspec(whh_f.shape),
        fullspec(whh_b.shape),
        fullspec(b_cat.shape),
        fullspec(convw.shape),
        fullspec(convb.shape),
        fullspec(fcw.shape),
        fullspec(fcb.shape),
    ]
    out_specs = pl.BlockSpec((None, TB, NC_pad), lambda i: (i, 0, 0))

    out = pl.pallas_call(
        rcnn_kernel,
        out_shape=jax.ShapeDtypeStruct((n_tiles, TB, NC_pad), jnp.float32),
        grid_spec=pltpu.PrefetchScalarGridSpec(
            num_scalar_prefetch=0,
            grid=(n_tiles,),
            in_specs=in_specs,
            out_specs=out_specs,
            scratch_shapes=[pltpu.VMEM((R, C_pad), jnp.float32)],
        ),
        compiler_params=pltpu.CompilerParams(
            dimension_semantics=("parallel",)),
    )(emb_tiles, wih_cat, whh_f, whh_b, b_cat, convw, convb, fcw, fcb)

    return out.reshape(B, NC_pad)[:, :nc]


def rcnn_reference(x_tokens, params):
    """Pure-JAX reference matching the kernel's bf16-MXU / f32-accumulate path."""
    f32 = jnp.float32
    bf16 = jnp.bfloat16
    emb = jnp.take(params["embedding"], x_tokens, axis=0).astype(f32)       # (B, T, E)
    B, T, E = emb.shape
    H = params["w_hh_f"].shape[1]

    def cell(gates, c):
        i = jax.nn.sigmoid(gates[:, 0 * H:1 * H])
        f = jax.nn.sigmoid(gates[:, 1 * H:2 * H])
        g = jnp.tanh(gates[:, 2 * H:3 * H])
        o = jax.nn.sigmoid(gates[:, 3 * H:4 * H])
        c = f * c + i * g
        return o * jnp.tanh(c), c

    def run(seq, wih, whh, b):
        wih = wih.T.astype(bf16)
        whh = whh.T.astype(bf16)
        h = jnp.zeros((B, H), f32); c = jnp.zeros((B, H), f32)
        hs = []
        for t in range(T):
            g = (jnp.dot(seq[:, t].astype(bf16), wih, preferred_element_type=f32) + b
                 + jnp.dot(h.astype(bf16), whh, preferred_element_type=f32))
            h, c = cell(g, c)
            hs.append(h)
        return jnp.stack(hs, axis=1)                                        # (B, T, H)

    h_fwd = run(emb, params["w_ih_f"], params["w_hh_f"],
                (params["b_ih_f"] + params["b_hh_f"]).astype(f32))
    h_bwd = run(emb[:, ::-1], params["w_ih_b"], params["w_hh_b"],
                (params["b_ih_b"] + params["b_hh_b"]).astype(f32))[:, ::-1]
    combined = jnp.concatenate([emb, h_fwd, h_bwd], axis=2)                 # (B, T, C)

    convw = jnp.transpose(params["conv_w"], (2, 1, 0)).astype(bf16)         # (3, C, O)
    padded = jnp.pad(combined, ((0, 0), (1, 1), (0, 0)))
    acc = jnp.einsum("btc,co->bto", padded[:, 0:T].astype(bf16), convw[0],
                     preferred_element_type=f32)
    acc = acc + jnp.einsum("btc,co->bto", combined.astype(bf16), convw[1],
                           preferred_element_type=f32)
    acc = acc + jnp.einsum("btc,co->bto", padded[:, 2:T + 2].astype(bf16), convw[2],
                           preferred_element_type=f32)
    conv = jnp.maximum(acc + params["conv_b"].reshape(1, 1, -1), 0.0)       # (B, T, O)
    pooled = conv.max(axis=1)                                               # (B, O)
    return jnp.dot(pooled, params["fc_w"].T.astype(f32)) + params["fc_b"]


def init_params(key, vocab_size, embedding_dim, hidden_dim, conv_channels, output_dim):
    ks = jax.random.split(key, 16)
    u = lambda k, shape: jax.random.uniform(k, shape, jnp.float32, -0.1, 0.1)
    H = hidden_dim
    C = embedding_dim + 2 * H
    return {
        "embedding": u(ks[0], (vocab_size, embedding_dim)),
        "w_ih_f": u(ks[1], (4 * H, embedding_dim)),
        "w_hh_f": u(ks[2], (4 * H, H)),
        "b_ih_f": u(ks[3], (4 * H,)),
        "b_hh_f": u(ks[4], (4 * H,)),
        "w_ih_b": u(ks[5], (4 * H, embedding_dim)),
        "w_hh_b": u(ks[6], (4 * H, H)),
        "b_ih_b": u(ks[7], (4 * H,)),
        "b_hh_b": u(ks[8], (4 * H,)),
        "conv_w": u(ks[9], (conv_channels, C, 3)),
        "conv_b": u(ks[10], (conv_channels,)),
        "fc_w": u(ks[11], (output_dim, conv_channels)),
        "fc_b": u(ks[12], (output_dim,)),
    }


if __name__ == "__main__":
    # Small, module-consistent shapes.
    vocab_size = 100
    embedding_dim = 32
    hidden_dim = 32
    conv_channels = 128        # hardcoded in the module (Conv1d out / fc in)
    output_dim = 3
    B, T = 2, 8

    key = jax.random.PRNGKey(0)
    k_params, k_x = jax.random.split(key)
    params = init_params(k_params, vocab_size, embedding_dim, hidden_dim,
                         conv_channels, output_dim)
    x = jax.random.randint(k_x, (B, T), 0, vocab_size, dtype=jnp.int32)

    logits = rcnn_forward(x, params)
    logits = jax.block_until_ready(logits)
    assert logits.shape == (B, output_dim)
    assert bool(jnp.all(jnp.isfinite(logits)))

    ref = jax.block_until_ready(rcnn_reference(x, params))
    assert np.allclose(np.asarray(logits), np.asarray(ref), rtol=5e-2, atol=5e-2), (
        f"kernel vs reference mismatch:\n{np.asarray(logits)}\nvs\n{np.asarray(ref)}")

    print("KERNEL_OK")
</pallas_src>

<mosaic_0001>
module attributes {stable_mosaic.version = 11 : i64} {
  func.func @rcnn_kernel(%arg0: i32, %arg1: memref<1x16x32xf32, #tpu.memory_space<vmem>>, %arg2: memref<32x256xbf16, #tpu.memory_space<vmem>>, %arg3: memref<32x128xbf16, #tpu.memory_space<vmem>>, %arg4: memref<32x128xbf16, #tpu.memory_space<vmem>>, %arg5: memref<1x256xf32, #tpu.memory_space<vmem>>, %arg6: memref<3x128x128xbf16, #tpu.memory_space<vmem>>, %arg7: memref<1x128xf32, #tpu.memory_space<vmem>>, %arg8: memref<128x128xf32, #tpu.memory_space<vmem>>, %arg9: memref<1x128xf32, #tpu.memory_space<vmem>>, %arg10: memref<1x2x128xf32, #tpu.memory_space<vmem>>, %arg11: memref<16x128xf32, #tpu.memory_space<vmem>>) attributes {dimension_semantics = [#tpu.dimension_semantics<parallel>], iteration_bounds = array<i64: 1>, scalar_prefetch = 0 : i64, scratch_operands = 1 : i64, tpu.core_type = #tpu.core_type<tc>, window_params = [{transform_indices = @transform_0, window_bounds = array<i64: 1, 16, 32>}, {pipeline_mode = #tpu.pipeline_mode<synchronous>, transform_indices = @transform_1, window_bounds = array<i64: 32, 256>}, {pipeline_mode = #tpu.pipeline_mode<synchronous>, transform_indices = @transform_2, window_bounds = array<i64: 32, 128>}, {pipeline_mode = #tpu.pipeline_mode<synchronous>, transform_indices = @transform_3, window_bounds = array<i64: 32, 128>}, {pipeline_mode = #tpu.pipeline_mode<synchronous>, transform_indices = @transform_4, window_bounds = array<i64: 1, 256>}, {pipeline_mode = #tpu.pipeline_mode<synchronous>, transform_indices = @transform_5, window_bounds = array<i64: 3, 128, 128>}, {pipeline_mode = #tpu.pipeline_mode<synchronous>, transform_indices = @transform_6, window_bounds = array<i64: 1, 128>}, {pipeline_mode = #tpu.pipeline_mode<synchronous>, transform_indices = @transform_7, window_bounds = array<i64: 128, 128>}, {pipeline_mode = #tpu.pipeline_mode<synchronous>, transform_indices = @transform_8, window_bounds = array<i64: 1, 128>}, {transform_indices = @transform_9, window_bounds = array<i64: 1, 2, 128>}]} {
    %cst = arith.constant 0.000000e+00 : f32
    %0 = vector.broadcast %cst : f32 to vector<16x128xf32>
    %c0 = arith.constant 0 : index
    %c0_0 = arith.constant 0 : index
    %1 = vector.load %arg11[%c0, %c0_0] : memref<16x128xf32, #tpu.memory_space<vmem>>, vector<16x128xf32>
    tpu.vector_store %arg11[%c0, %c0_0], %0 {strides = array<i32>} : memref<16x128xf32, #tpu.memory_space<vmem>>, vector<16x128xf32>,
    %c0_1 = arith.constant 0 : index
    %c0_2 = arith.constant 0 : index
    %c0_3 = arith.constant 0 : index
    %2 = vector.load %arg1[%c0_1, %c0_2, %c0_3] : memref<1x16x32xf32, #tpu.memory_space<vmem>>, vector<1x16x32xf32>
    %3 = vector.shape_cast %2 : vector<1x16x32xf32> to vector<16x32xf32>
    %c0_4 = arith.constant 0 : index
    %c0_5 = arith.constant 0 : index
    %4 = vector.load %arg11[%c0_4, %c0_5] : memref<16x128xf32, #tpu.memory_space<vmem>>, vector<16x32xf32>
    tpu.vector_store %arg11[%c0_4, %c0_5], %3 {strides = array<i32>} : memref<16x128xf32, #tpu.memory_space<vmem>>, vector<16x32xf32>,
    %5 = arith.truncf %3 : vector<16x32xf32> to vector<16x32xbf16>
    %c0_6 = arith.constant 0 : index
    %c0_7 = arith.constant 0 : index
    %6 = vector.load %arg2[%c0_6, %c0_7] : memref<32x256xbf16, #tpu.memory_space<vmem>>, vector<32x256xbf16>
    %cst_8 = arith.constant dense<0.000000e+00> : vector<16x256xf32>
    %7 = tpu.matmul %5, %6, %cst_8 {dimension_numbers = #tpu.dot_dimension_numbers<[1], [0], [0], [1], [0, 0, 1, 1], [], []>} : vector<16x32xbf16>, vector<32x256xbf16>, vector<16x256xf32> -> vector<16x256xf32>
    %c0_9 = arith.constant 0 : index
    %c0_10 = arith.constant 0 : index
    %8 = vector.load %arg5[%c0_9, %c0_10] : memref<1x256xf32, #tpu.memory_space<vmem>>, vector<1x256xf32>
    %9 = vector.broadcast %8 : vector<1x256xf32> to vector<16x256xf32>
    %10 = arith.addf %7, %9 : vector<16x256xf32>
    %c0_11 = arith.constant 0 : index
    %c0_12 = arith.constant 0 : index
    %11 = vector.load %arg3[%c0_11, %c0_12] : memref<32x128xbf16, #tpu.memory_space<vmem>>, vector<32x128xbf16>
    %c0_13 = arith.constant 0 : index
    %c0_14 = arith.constant 0 : index
    %12 = vector.load %arg4[%c0_13, %c0_14] : memref<32x128xbf16, #tpu.memory_space<vmem>>, vector<32x128xbf16>
    %cst_15 = arith.constant 0.000000e+00 : f32
    %13 = vector.broadcast %cst_15 : f32 to vector<2x32xf32>
    %cst_16 = arith.constant 0.000000e+00 : f32
    %14 = vector.broadcast %cst_16 : f32 to vector<2x32xf32>
    %cst_17 = arith.constant 0.000000e+00 : f32
    %15 = vector.broadcast %cst_17 : f32 to vector<2x32xf32>
    %cst_18 = arith.constant 0.000000e+00 : f32
    %16 = vector.broadcast %cst_18 : f32 to vector<2x32xf32>
    %17 = vector.extract_strided_slice %10 {offsets = [0, 0], sizes = [2, 128], strides = [1, 1]} : vector<16x256xf32> to vector<2x128xf32>
    %18 = arith.truncf %13 : vector<2x32xf32> to vector<2x32xbf16>
    %cst_19 = arith.constant dense<0.000000e+00> : vector<2x128xf32>
    %19 = tpu.matmul %18, %11, %cst_19 {dimension_numbers = #tpu.dot_dimension_numbers<[1], [0], [0], [1], [0, 0, 1, 1], [], []>} : vector<2x32xbf16>, vector<32x128xbf16>, vector<2x128xf32> -> vector<2x128xf32>
    %20 = arith.addf %17, %19 : vector<2x128xf32>
    %21 = vector.extract_strided_slice %10 {offsets = [14, 128], sizes = [2, 128], strides = [1, 1]} : vector<16x256xf32> to vector<2x128xf32>
    %22 = arith.truncf %15 : vector<2x32xf32> to vector<2x32xbf16>
    %cst_20 = arith.constant dense<0.000000e+00> : vector<2x128xf32>
    %23 = tpu.matmul %22, %12, %cst_20 {dimension_numbers = #tpu.dot_dimension_numbers<[1], [0], [0], [1], [0, 0, 1, 1], [], []>} : vector<2x32xbf16>, vector<32x128xbf16>, vector<2x128xf32> -> vector<2x128xf32>
    %24 = arith.addf %21, %23 : vector<2x128xf32>
    %25 = vector.extract_strided_slice %20 {offsets = [0, 0], sizes = [2, 32], strides = [1, 1]} : vector<2x128xf32> to vector<2x32xf32>
    %26 = arith.negf %25 : vector<2x32xf32>
    %27 = math.exp %26 : vector<2x32xf32>
    %cst_21 = arith.constant 1.000000e+00 : f32
    %28 = vector.broadcast %cst_21 : f32 to vector<2x32xf32>
    %29 = arith.addf %28, %27 : vector<2x32xf32>
    %30 = arith.divf %28, %29 : vector<2x32xf32>
    %31 = vector.extract_strided_slice %20 {offsets = [0, 32], sizes = [2, 32], strides = [1, 1]} : vector<2x128xf32> to vector<2x32xf32>
    %32 = arith.negf %31 : vector<2x32xf32>
    %33 = math.exp %32 : vector<2x32xf32>
    %cst_22 = arith.constant 1.000000e+00 : f32
    %34 = vector.broadcast %cst_22 : f32 to vector<2x32xf32>
    %35 = arith.addf %34, %33 : vector<2x32xf32>
    %36 = arith.divf %34, %35 : vector<2x32xf32>
    %37 = vector.extract_strided_slice %20 {offsets = [0, 64], sizes = [2, 32], strides = [1, 1]} : vector<2x128xf32> to vector<2x32xf32>
    %38 = math.tanh %37 : vector<2x32xf32>
    %39 = vector.extract_strided_slice %20 {offsets = [0, 96], sizes = [2, 32], strides = [1, 1]} : vector<2x128xf32> to vector<2x32xf32>
    %40 = arith.negf %39 : vector<2x32xf32>
    %41 = math.exp %40 : vector<2x32xf32>
    %cst_23 = arith.constant 1.000000e+00 : f32
    %42 = vector.broadcast %cst_23 : f32 to vector<2x32xf32>
    %43 = arith.addf %42, %41 : vector<2x32xf32>
    %44 = arith.divf %42, %43 : vector<2x32xf32>
    %45 = arith.mulf %36, %14 : vector<2x32xf32>
    %46 = arith.mulf %30, %38 : vector<2x32xf32>
    %47 = arith.addf %45, %46 : vector<2x32xf32>
    %48 = math.tanh %47 : vector<2x32xf32>
    %49 = arith.mulf %44, %48 : vector<2x32xf32>
    %50 = vector.extract_strided_slice %24 {offsets = [0, 0], sizes = [2, 32], strides = [1, 1]} : vector<2x128xf32> to vector<2x32xf32>
    %51 = arith.negf %50 : vector<2x32xf32>
    %52 = math.exp %51 : vector<2x32xf32>
    %cst_24 = arith.constant 1.000000e+00 : f32
    %53 = vector.broadcast %cst_24 : f32 to vector<2x32xf32>
    %54 = arith.addf %53, %52 : vector<2x32xf32>
    %55 = arith.divf %53, %54 : vector<2x32xf32>
    %56 = vector.extract_strided_slice %24 {offsets = [0, 32], sizes = [2, 32], strides = [1, 1]} : vector<2x128xf32> to vector<2x32xf32>
    %57 = arith.negf %56 : vector<2x32xf32>
    %58 = math.exp %57 : vector<2x32xf32>
    %cst_25 = arith.constant 1.000000e+00 : f32
    %59 = vector.broadcast %cst_25 : f32 to vector<2x32xf32>
    %60 = arith.addf %59, %58 : vector<2x32xf32>
    %61 = arith.divf %59, %60 : vector<2x32xf32>
    %62 = vector.extract_strided_slice %24 {offsets = [0, 64], sizes = [2, 32], strides = [1, 1]} : vector<2x128xf32> to vector<2x32xf32>
    %63 = math.tanh %62 : vector<2x32xf32>
    %64 = vector.extract_strided_slice %24 {offsets = [0, 96], sizes = [2, 32], strides = [1, 1]} : vector<2x128xf32> to vector<2x32xf32>
    %65 = arith.negf %64 : vector<2x32xf32>
    %66 = math.exp %65 : vector<2x32xf32>
    %cst_26 = arith.constant 1.000000e+00 : f32
    %67 = vector.broadcast %cst_26 : f32 to vector<2x32xf32>
    %68 = arith.addf %67, %66 : vector<2x32xf32>
    %69 = arith.divf %67, %68 : vector<2x32xf32>
    %70 = arith.mulf %61, %16 : vector<2x32xf32>
    %71 = arith.mulf %55, %63 : vector<2x32xf32>
    %72 = arith.addf %70, %71 : vector<2x32xf32>
    %73 = math.tanh %72 : vector<2x32xf32>
    %74 = arith.mulf %69, %73 : vector<2x32xf32>
    %c0_27 = arith.constant 0 : index
    %c32 = arith.constant 32 : index
    %75 = vector.load %arg11[%c0_27, %c32] : memref<16x128xf32, #tpu.memory_space<vmem>>, vector<2x32xf32>
    tpu.vector_store %arg11[%c0_27, %c32], %49 {strides = array<i32>} : memref<16x128xf32, #tpu.memory_space<vmem>>, vector<2x32xf32>,
    %c14 = arith.constant 14 : index
    %c64 = arith.constant 64 : index
    %76 = vector.load %arg11[%c14, %c64] : memref<16x128xf32, #tpu.memory_space<vmem>>, vector<2x32xf32>
    tpu.vector_store %arg11[%c14, %c64], %74 {strides = array<i32>} : memref<16x128xf32, #tpu.memory_space<vmem>>, vector<2x32xf32>,
    %77 = vector.extract_strided_slice %10 {offsets = [2, 0], sizes = [2, 128], strides = [1, 1]} : vector<16x256xf32> to vector<2x128xf32>
    %78 = arith.truncf %49 : vector<2x32xf32> to vector<2x32xbf16>
    %cst_28 = arith.constant dense<0.000000e+00> : vector<2x128xf32>
    %79 = tpu.matmul %78, %11, %cst_28 {dimension_numbers = #tpu.dot_dimension_numbers<[1], [0], [0], [1], [0, 0, 1, 1], [], []>} : vector<2x32xbf16>, vector<32x128xbf16>, vector<2x128xf32> -> vector<2x128xf32>
    %80 = arith.addf %77, %79 : vector<2x128xf32>
    %81 = vector.extract_strided_slice %10 {offsets = [12, 128], sizes = [2, 128], strides = [1, 1]} : vector<16x256xf32> to vector<2x128xf32>
    %82 = arith.truncf %74 : vector<2x32xf32> to vector<2x32xbf16>
    %cst_29 = arith.constant dense<0.000000e+00> : vector<2x128xf32>
    %83 = tpu.matmul %82, %12, %cst_29 {dimension_numbers = #tpu.dot_dimension_numbers<[1], [0], [0], [1], [0, 0, 1, 1], [], []>} : vector<2x32xbf16>, vector<32x128xbf16>, vector<2x128xf32> -> vector<2x128xf32>
    %84 = arith.addf %81, %83 : vector<2x128xf32>
    %85 = vector.extract_strided_slice %80 {offsets = [0, 0], sizes = [2, 32], strides = [1, 1]} : vector<2x128xf32> to vector<2x32xf32>
    %86 = arith.negf %85 : vector<2x32xf32>
    %87 = math.exp %86 : vector<2x32xf32>
    %cst_30 = arith.constant 1.000000e+00 : f32
    %88 = vector.broadcast %cst_30 : f32 to vector<2x32xf32>
    %89 = arith.addf %88, %87 : vector<2x32xf32>
    %90 = arith.divf %88, %89 : vector<2x32xf32>
    %91 = vector.extract_strided_slice %80 {offsets = [0, 32], sizes = [2, 32], strides = [1, 1]} : vector<2x128xf32> to vector<2x32xf32>
    %92 = arith.negf %91 : vector<2x32xf32>
    %93 = math.exp %92 : vector<2x32xf32>
    %cst_31 = arith.constant 1.000000e+00 : f32
    %94 = vector.broadcast %cst_31 : f32 to vector<2x32xf32>
    %95 = arith.addf %94, %93 : vector<2x32xf32>
    %96 = arith.divf %94, %95 : vector<2x32xf32>
    %97 = vector.extract_strided_slice %80 {offsets = [0, 64], sizes = [2, 32], strides = [1, 1]} : vector<2x128xf32> to vector<2x32xf32>
    %98 = math.tanh %97 : vector<2x32xf32>
    %99 = vector.extract_strided_slice %80 {offsets = [0, 96], sizes = [2, 32], strides = [1, 1]} : vector<2x128xf32> to vector<2x32xf32>
    %100 = arith.negf %99 : vector<2x32xf32>
    %101 = math.exp %100 : vector<2x32xf32>
    %cst_32 = arith.constant 1.000000e+00 : f32
    %102 = vector.broadcast %cst_32 : f32 to vector<2x32xf32>
    %103 = arith.addf %102, %101 : vector<2x32xf32>
    %104 = arith.divf %102, %103 : vector<2x32xf32>
    %105 = arith.mulf %96, %47 : vector<2x32xf32>
    %106 = arith.mulf %90, %98 : vector<2x32xf32>
    %107 = arith.addf %105, %106 : vector<2x32xf32>
    %108 = math.tanh %107 : vector<2x32xf32>
    %109 = arith.mulf %104, %108 : vector<2x32xf32>
    %110 = vector.extract_strided_slice %84 {offsets = [0, 0], sizes = [2, 32], strides = [1, 1]} : vector<2x128xf32> to vector<2x32xf32>
    %111 = arith.negf %110 : vector<2x32xf32>
    %112 = math.exp %111 : vector<2x32xf32>
    %cst_33 = arith.constant 1.000000e+00 : f32
    %113 = vector.broadcast %cst_33 : f32 to vector<2x32xf32>
    %114 = arith.addf %113, %112 : vector<2x32xf32>
    %115 = arith.divf %113, %114 : vector<2x32xf32>
    %116 = vector.extract_strided_slice %84 {offsets = [0, 32], sizes = [2, 32], strides = [1, 1]} : vector<2x128xf32> to vector<2x32xf32>
    %117 = arith.negf %116 : vector<2x32xf32>
    %118 = math.exp %117 : vector<2x32xf32>
    %cst_34 = arith.constant 1.000000e+00 : f32
    %119 = vector.broadcast %cst_34 : f32 to vector<2x32xf32>
    %120 = arith.addf %119, %118 : vector<2x32xf32>
    %121 = arith.divf %119, %120 : vector<2x32xf32>
    %122 = vector.extract_strided_slice %84 {offsets = [0, 64], sizes = [2, 32], strides = [1, 1]} : vector<2x128xf32> to vector<2x32xf32>
    %123 = math.tanh %122 : vector<2x32xf32>
    %124 = vector.extract_strided_slice %84 {offsets = [0, 96], sizes = [2, 32], strides = [1, 1]} : vector<2x128xf32> to vector<2x32xf32>
    %125 = arith.negf %124 : vector<2x32xf32>
    %126 = math.exp %125 : vector<2x32xf32>
    %cst_35 = arith.constant 1.000000e+00 : f32
    %127 = vector.broadcast %cst_35 : f32 to vector<2x32xf32>
    %128 = arith.addf %127, %126 : vector<2x32xf32>
    %129 = arith.divf %127, %128 : vector<2x32xf32>
    %130 = arith.mulf %121, %72 : vector<2x32xf32>
    %131 = arith.mulf %115, %123 : vector<2x32xf32>
    %132 = arith.addf %130, %131 : vector<2x32xf32>
    %133 = math.tanh %132 : vector<2x32xf32>
    %134 = arith.mulf %129, %133 : vector<2x32xf32>
    %c2 = arith.constant 2 : index
    %c32_36 = arith.constant 32 : index
    %135 = vector.load %arg11[%c2, %c32_36] : memref<16x128xf32, #tpu.memory_space<vmem>>, vector<2x32xf32>
    tpu.vector_store %arg11[%c2, %c32_36], %109 {strides = array<i32>} : memref<16x128xf32, #tpu.memory_space<vmem>>, vector<2x32xf32>,
    %c12 = arith.constant 12 : index
    %c64_37 = arith.constant 64 : index
    %136 = vector.load %arg11[%c12, %c64_37] : memref<16x128xf32, #tpu.memory_space<vmem>>, vector<2x32xf32>
    tpu.vector_store %arg11[%c12, %c64_37], %134 {strides = array<i32>} : memref<16x128xf32, #tpu.memory_space<vmem>>, vector<2x32xf32>,
    %137 = vector.extract_strided_slice %10 {offsets = [4, 0], sizes = [2, 128], strides = [1, 1]} : vector<16x256xf32> to vector<2x128xf32>
    %138 = arith.truncf %109 : vector<2x32xf32> to vector<2x32xbf16>
    %cst_38 = arith.constant dense<0.000000e+00> : vector<2x128xf32>
    %139 = tpu.matmul %138, %11, %cst_38 {dimension_numbers = #tpu.dot_dimension_numbers<[1], [0], [0], [1], [0, 0, 1, 1], [], []>} : vector<2x32xbf16>, vector<32x128xbf16>, vector<2x128xf32> -> vector<2x128xf32>
    %140 = arith.addf %137, %139 : vector<2x128xf32>
    %141 = vector.extract_strided_slice %10 {offsets = [10, 128], sizes = [2, 128], strides = [1, 1]} : vector<16x256xf32> to vector<2x128xf32>
    %142 = arith.truncf %134 : vector<2x32xf32> to vector<2x32xbf16>
    %cst_39 = arith.constant dense<0.000000e+00> : vector<2x128xf32>
    %143 = tpu.matmul %142, %12, %cst_39 {dimension_numbers = #tpu.dot_dimension_numbers<[1], [0], [0], [1], [0, 0, 1, 1], [], []>} : vector<2x32xbf16>, vector<32x128xbf16>, vector<2x128xf32> -> vector<2x128xf32>
    %144 = arith.addf %141, %143 : vector<2x128xf32>
    %145 = vector.extract_strided_slice %140 {offsets = [0, 0], sizes = [2, 32], strides = [1, 1]} : vector<2x128xf32> to vector<2x32xf32>
    %146 = arith.negf %145 : vector<2x32xf32>
    %147 = math.exp %146 : vector<2x32xf32>
    %cst_40 = arith.constant 1.000000e+00 : f32
    %148 = vector.broadcast %cst_40 : f32 to vector<2x32xf32>
    %149 = arith.addf %148, %147 : vector<2x32xf32>
    %150 = arith.divf %148, %149 : vector<2x32xf32>
    %151 = vector.extract_strided_slice %140 {offsets = [0, 32], sizes = [2, 32], strides = [1, 1]} : vector<2x128xf32> to vector<2x32xf32>
    %152 = arith.negf %151 : vector<2x32xf32>
    %153 = math.exp %152 : vector<2x32xf32>
    %cst_41 = arith.constant 1.000000e+00 : f32
    %154 = vector.broadcast %cst_41 : f32 to vector<2x32xf32>
    %155 = arith.addf %154, %153 : vector<2x32xf32>
    %156 = arith.divf %154, %155 : vector<2x32xf32>
    %157 = vector.extract_strided_slice %140 {offsets = [0, 64], sizes = [2, 32], strides = [1, 1]} : vector<2x128xf32> to vector<2x32xf32>
    %158 = math.tanh %157 : vector<2x32xf32>
    %159 = vector.extract_strided_slice %140 {offsets = [0, 96], sizes = [2, 32], strides = [1, 1]} : vector<2x128xf32> to vector<2x32xf32>
    %160 = arith.negf %159 : vector<2x32xf32>
    %161 = math.exp %160 : vector<2x32xf32>
    %cst_42 = arith.constant 1.000000e+00 : f32
    %162 = vector.broadcast %cst_42 : f32 to vector<2x32xf32>
    %163 = arith.addf %162, %161 : vector<2x32xf32>
    %164 = arith.divf %162, %163 : vector<2x32xf32>
    %165 = arith.mulf %156, %107 : vector<2x32xf32>
    %166 = arith.mulf %150, %158 : vector<2x32xf32>
    %167 = arith.addf %165, %166 : vector<2x32xf32>
    %168 = math.tanh %167 : vector<2x32xf32>
    %169 = arith.mulf %164, %168 : vector<2x32xf32>
    %170 = vector.extract_strided_slice %144 {offsets = [0, 0], sizes = [2, 32], strides = [1, 1]} : vector<2x128xf32> to vector<2x32xf32>
    %171 = arith.negf %170 : vector<2x32xf32>
    %172 = math.exp %171 : vector<2x32xf32>
    %cst_43 = arith.constant 1.000000e+00 : f32
    %173 = vector.broadcast %cst_43 : f32 to vector<2x32xf32>
    %174 = arith.addf %173, %172 : vector<2x32xf32>
    %175 = arith.divf %173, %174 : vector<2x32xf32>
    %176 = vector.extract_strided_slice %144 {offsets = [0, 32], sizes = [2, 32], strides = [1, 1]} : vector<2x128xf32> to vector<2x32xf32>
    %177 = arith.negf %176 : vector<2x32xf32>
    %178 = math.exp %177 : vector<2x32xf32>
    %cst_44 = arith.constant 1.000000e+00 : f32
    %179 = vector.broadcast %cst_44 : f32 to vector<2x32xf32>
    %180 = arith.addf %179, %178 : vector<2x32xf32>
    %181 = arith.divf %179, %180 : vector<2x32xf32>
    %182 = vector.extract_strided_slice %144 {offsets = [0, 64], sizes = [2, 32], strides = [1, 1]} : vector<2x128xf32> to vector<2x32xf32>
    %183 = math.tanh %182 : vector<2x32xf32>
    %184 = vector.extract_strided_slice %144 {offsets = [0, 96], sizes = [2, 32], strides = [1, 1]} : vector<2x128xf32> to vector<2x32xf32>
    %185 = arith.negf %184 : vector<2x32xf32>
    %186 = math.exp %185 : vector<2x32xf32>
    %cst_45 = arith.constant 1.000000e+00 : f32
    %187 = vector.broadcast %cst_45 : f32 to vector<2x32xf32>
    %188 = arith.addf %187, %186 : vector<2x32xf32>
    %189 = arith.divf %187, %188 : vector<2x32xf32>
    %190 = arith.mulf %181, %132 : vector<2x32xf32>
    %191 = arith.mulf %175, %183 : vector<2x32xf32>
    %192 = arith.addf %190, %191 : vector<2x32xf32>
    %193 = math.tanh %192 : vector<2x32xf32>
    %194 = arith.mulf %189, %193 : vector<2x32xf32>
    %c4 = arith.constant 4 : index
    %c32_46 = arith.constant 32 : index
    %195 = vector.load %arg11[%c4, %c32_46] : memref<16x128xf32, #tpu.memory_space<vmem>>, vector<2x32xf32>
    tpu.vector_store %arg11[%c4, %c32_46], %169 {strides = array<i32>} : memref<16x128xf32, #tpu.memory_space<vmem>>, vector<2x32xf32>,
    %c10 = arith.constant 10 : index
    %c64_47 = arith.constant 64 : index
    %196 = vector.load %arg11[%c10, %c64_47] : memref<16x128xf32, #tpu.memory_space<vmem>>, vector<2x32xf32>
    tpu.vector_store %arg11[%c10, %c64_47], %194 {strides = array<i32>} : memref<16x128xf32, #tpu.memory_space<vmem>>, vector<2x32xf32>,
    %197 = vector.extract_strided_slice %10 {offsets = [6, 0], sizes = [2, 128], strides = [1, 1]} : vector<16x256xf32> to vector<2x128xf32>
    %198 = arith.truncf %169 : vector<2x32xf32> to vector<2x32xbf16>
    %cst_48 = arith.constant dense<0.000000e+00> : vector<2x128xf32>
    %199 = tpu.matmul %198, %11, %cst_48 {dimension_numbers = #tpu.dot_dimension_numbers<[1], [0], [0], [1], [0, 0, 1, 1], [], []>} : vector<2x32xbf16>, vector<32x128xbf16>, vector<2x128xf32> -> vector<2x128xf32>
    %200 = arith.addf %197, %199 : vector<2x128xf32>
    %201 = vector.extract_strided_slice %10 {offsets = [8, 128], sizes = [2, 128], strides = [1, 1]} : vector<16x256xf32> to vector<2x128xf32>
    %202 = arith.truncf %194 : vector<2x32xf32> to vector<2x32xbf16>
    %cst_49 = arith.constant dense<0.000000e+00> : vector<2x128xf32>
    %203 = tpu.matmul %202, %12, %cst_49 {dimension_numbers = #tpu.dot_dimension_numbers<[1], [0], [0], [1], [0, 0, 1, 1], [], []>} : vector<2x32xbf16>, vector<32x128xbf16>, vector<2x128xf32> -> vector<2x128xf32>
    %204 = arith.addf %201, %203 : vector<2x128xf32>
    %205 = vector.extract_strided_slice %200 {offsets = [0, 0], sizes = [2, 32], strides = [1, 1]} : vector<2x128xf32> to vector<2x32xf32>
    %206 = arith.negf %205 : vector<2x32xf32>
    %207 = math.exp %206 : vector<2x32xf32>
    %cst_50 = arith.constant 1.000000e+00 : f32
    %208 = vector.broadcast %cst_50 : f32 to vector<2x32xf32>
    %209 = arith.addf %208, %207 : vector<2x32xf32>
    %210 = arith.divf %208, %209 : vector<2x32xf32>
    %211 = vector.extract_strided_slice %200 {offsets = [0, 32], sizes = [2, 32], strides = [1, 1]} : vector<2x128xf32> to vector<2x32xf32>
    %212 = arith.negf %211 : vector<2x32xf32>
    %213 = math.exp %212 : vector<2x32xf32>
    %cst_51 = arith.constant 1.000000e+00 : f32
    %214 = vector.broadcast %cst_51 : f32 to vector<2x32xf32>
    %215 = arith.addf %214, %213 : vector<2x32xf32>
    %216 = arith.divf %214, %215 : vector<2x32xf32>
    %217 = vector.extract_strided_slice %200 {offsets = [0, 64], sizes = [2, 32], strides = [1, 1]} : vector<2x128xf32> to vector<2x32xf32>
    %218 = math.tanh %217 : vector<2x32xf32>
    %219 = vector.extract_strided_slice %200 {offsets = [0, 96], sizes = [2, 32], strides = [1, 1]} : vector<2x128xf32> to vector<2x32xf32>
    %220 = arith.negf %219 : vector<2x32xf32>
    %221 = math.exp %220 : vector<2x32xf32>
    %cst_52 = arith.constant 1.000000e+00 : f32
    %222 = vector.broadcast %cst_52 : f32 to vector<2x32xf32>
    %223 = arith.addf %222, %221 : vector<2x32xf32>
    %224 = arith.divf %222, %223 : vector<2x32xf32>
    %225 = arith.mulf %216, %167 : vector<2x32xf32>
    %226 = arith.mulf %210, %218 : vector<2x32xf32>
    %227 = arith.addf %225, %226 : vector<2x32xf32>
    %228 = math.tanh %227 : vector<2x32xf32>
    %229 = arith.mulf %224, %228 : vector<2x32xf32>
    %230 = vector.extract_strided_slice %204 {offsets = [0, 0], sizes = [2, 32], strides = [1, 1]} : vector<2x128xf32> to vector<2x32xf32>
    %231 = arith.negf %230 : vector<2x32xf32>
    %232 = math.exp %231 : vector<2x32xf32>
    %cst_53 = arith.constant 1.000000e+00 : f32
    %233 = vector.broadcast %cst_53 : f32 to vector<2x32xf32>
    %234 = arith.addf %233, %232 : vector<2x32xf32>
    %235 = arith.divf %233, %234 : vector<2x32xf32>
    %236 = vector.extract_strided_slice %204 {offsets = [0, 32], sizes = [2, 32], strides = [1, 1]} : vector<2x128xf32> to vector<2x32xf32>
    %237 = arith.negf %236 : vector<2x32xf32>
    %238 = math.exp %237 : vector<2x32xf32>
    %cst_54 = arith.constant 1.000000e+00 : f32
    %239 = vector.broadcast %cst_54 : f32 to vector<2x32xf32>
    %240 = arith.addf %239, %238 : vector<2x32xf32>
    %241 = arith.divf %239, %240 : vector<2x32xf32>
    %242 = vector.extract_strided_slice %204 {offsets = [0, 64], sizes = [2, 32], strides = [1, 1]} : vector<2x128xf32> to vector<2x32xf32>
    %243 = math.tanh %242 : vector<2x32xf32>
    %244 = vector.extract_strided_slice %204 {offsets = [0, 96], sizes = [2, 32], strides = [1, 1]} : vector<2x128xf32> to vector<2x32xf32>
    %245 = arith.negf %244 : vector<2x32xf32>
    %246 = math.exp %245 : vector<2x32xf32>
    %cst_55 = arith.constant 1.000000e+00 : f32
    %247 = vector.broadcast %cst_55 : f32 to vector<2x32xf32>
    %248 = arith.addf %247, %246 : vector<2x32xf32>
    %249 = arith.divf %247, %248 : vector<2x32xf32>
    %250 = arith.mulf %241, %192 : vector<2x32xf32>
    %251 = arith.mulf %235, %243 : vector<2x32xf32>
    %252 = arith.addf %250, %251 : vector<2x32xf32>
    %253 = math.tanh %252 : vector<2x32xf32>
    %254 = arith.mulf %249, %253 : vector<2x32xf32>
    %c6 = arith.constant 6 : index
    %c32_56 = arith.constant 32 : index
    %255 = vector.load %arg11[%c6, %c32_56] : memref<16x128xf32, #tpu.memory_space<vmem>>, vector<2x32xf32>
    tpu.vector_store %arg11[%c6, %c32_56], %229 {strides = array<i32>} : memref<16x128xf32, #tpu.memory_space<vmem>>, vector<2x32xf32>,
    %c8 = arith.constant 8 : index
    %c64_57 = arith.constant 64 : index
    %256 = vector.load %arg11[%c8, %c64_57] : memref<16x128xf32, #tpu.memory_space<vmem>>, vector<2x32xf32>
    tpu.vector_store %arg11[%c8, %c64_57], %254 {strides = array<i32>} : memref<16x128xf32, #tpu.memory_space<vmem>>, vector<2x32xf32>,
    %257 = vector.extract_strided_slice %10 {offsets = [8, 0], sizes = [2, 128], strides = [1, 1]} : vector<16x256xf32> to vector<2x128xf32>
    %258 = arith.truncf %229 : vector<2x32xf32> to vector<2x32xbf16>
    %cst_58 = arith.constant dense<0.000000e+00> : vector<2x128xf32>
    %259 = tpu.matmul %258, %11, %cst_58 {dimension_numbers = #tpu.dot_dimension_numbers<[1], [0], [0], [1], [0, 0, 1, 1], [], []>} : vector<2x32xbf16>, vector<32x128xbf16>, vector<2x128xf32> -> vector<2x128xf32>
    %260 = arith.addf %257, %259 : vector<2x128xf32>
    %261 = vector.extract_strided_slice %10 {offsets = [6, 128], sizes = [2, 128], strides = [1, 1]} : vector<16x256xf32> to vector<2x128xf32>
    %262 = arith.truncf %254 : vector<2x32xf32> to vector<2x32xbf16>
    %cst_59 = arith.constant dense<0.000000e+00> : vector<2x128xf32>
    %263 = tpu.matmul %262, %12, %cst_59 {dimension_numbers = #tpu.dot_dimension_numbers<[1], [0], [0], [1], [0, 0, 1, 1], [], []>} : vector<2x32xbf16>, vector<32x128xbf16>, vector<2x128xf32> -> vector<2x128xf32>
    %264 = arith.addf %261, %263 : vector<2x128xf32>
    %265 = vector.extract_strided_slice %260 {offsets = [0, 0], sizes = [2, 32], strides = [1, 1]} : vector<2x128xf32> to vector<2x32xf32>
    %266 = arith.negf %265 : vector<2x32xf32>
    %267 = math.exp %266 : vector<2x32xf32>
    %cst_60 = arith.constant 1.000000e+00 : f32
    %268 = vector.broadcast %cst_60 : f32 to vector<2x32xf32>
    %269 = arith.addf %268, %267 : vector<2x32xf32>
    %270 = arith.divf %268, %269 : vector<2x32xf32>
    %271 = vector.extract_strided_slice %260 {offsets = [0, 32], sizes = [2, 32], strides = [1, 1]} : vector<2x128xf32> to vector<2x32xf32>
    %272 = arith.negf %271 : vector<2x32xf32>
    %273 = math.exp %272 : vector<2x32xf32>
    %cst_61 = arith.constant 1.000000e+00 : f32
    %274 = vector.broadcast %cst_61 : f32 to vector<2x32xf32>
    %275 = arith.addf %274, %273 : vector<2x32xf32>
    %276 = arith.divf %274, %275 : vector<2x32xf32>
    %277 = vector.extract_strided_slice %260 {offsets = [0, 64], sizes = [2, 32], strides = [1, 1]} : vector<2x128xf32> to vector<2x32xf32>
    %278 = math.tanh %277 : vector<2x32xf32>
    %279 = vector.extract_strided_slice %260 {offsets = [0, 96], sizes = [2, 32], strides = [1, 1]} : vector<2x128xf32> to vector<2x32xf32>
    %280 = arith.negf %279 : vector<2x32xf32>
    %281 = math.exp %280 : vector<2x32xf32>
    %cst_62 = arith.constant 1.000000e+00 : f32
    %282 = vector.broadcast %cst_62 : f32 to vector<2x32xf32>
    %283 = arith.addf %282, %281 : vector<2x32xf32>
    %284 = arith.divf %282, %283 : vector<2x32xf32>
    %285 = arith.mulf %276, %227 : vector<2x32xf32>
    %286 = arith.mulf %270, %278 : vector<2x32xf32>
    %287 = arith.addf %285, %286 : vector<2x32xf32>
    %288 = math.tanh %287 : vector<2x32xf32>
    %289 = arith.mulf %284, %288 : vector<2x32xf32>
    %290 = vector.extract_strided_slice %264 {offsets = [0, 0], sizes = [2, 32], strides = [1, 1]} : vector<2x128xf32> to vector<2x32xf32>
    %291 = arith.negf %290 : vector<2x32xf32>
    %292 = math.exp %291 : vector<2x32xf32>
    %cst_63 = arith.constant 1.000000e+00 : f32
    %293 = vector.broadcast %cst_63 : f32 to vector<2x32xf32>
    %294 = arith.addf %293, %292 : vector<2x32xf32>
    %295 = arith.divf %293, %294 : vector<2x32xf32>
    %296 = vector.extract_strided_slice %264 {offsets = [0, 32], sizes = [2, 32], strides = [1, 1]} : vector<2x128xf32> to vector<2x32xf32>
    %297 = arith.negf %296 : vector<2x32xf32>
    %298 = math.exp %297 : vector<2x32xf32>
    %cst_64 = arith.constant 1.000000e+00 : f32
    %299 = vector.broadcast %cst_64 : f32 to vector<2x32xf32>
    %300 = arith.addf %299, %298 : vector<2x32xf32>
    %301 = arith.divf %299, %300 : vector<2x32xf32>
    %302 = vector.extract_strided_slice %264 {offsets = [0, 64], sizes = [2, 32], strides = [1, 1]} : vector<2x128xf32> to vector<2x32xf32>
    %303 = math.tanh %302 : vector<2x32xf32>
    %304 = vector.extract_strided_slice %264 {offsets = [0, 96], sizes = [2, 32], strides = [1, 1]} : vector<2x128xf32> to vector<2x32xf32>
    %305 = arith.negf %304 : vector<2x32xf32>
    %306 = math.exp %305 : vector<2x32xf32>
    %cst_65 = arith.constant 1.000000e+00 : f32
    %307 = vector.broadcast %cst_65 : f32 to vector<2x32xf32>
    %308 = arith.addf %307, %306 : vector<2x32xf32>
    %309 = arith.divf %307, %308 : vector<2x32xf32>
    %310 = arith.mulf %301, %252 : vector<2x32xf32>
    %311 = arith.mulf %295, %303 : vector<2x32xf32>
    %312 = arith.addf %310, %311 : vector<2x32xf32>
    %313 = math.tanh %312 : vector<2x32xf32>
    %314 = arith.mulf %309, %313 : vector<2x32xf32>
    %c8_66 = arith.constant 8 : index
    %c32_67 = arith.constant 32 : index
    %315 = vector.load %arg11[%c8_66, %c32_67] : memref<16x128xf32, #tpu.memory_space<vmem>>, vector<2x32xf32>
    tpu.vector_store %arg11[%c8_66, %c32_67], %289 {strides = array<i32>} : memref<16x128xf32, #tpu.memory_space<vmem>>, vector<2x32xf32>,
    %c6_68 = arith.constant 6 : index
    %c64_69 = arith.constant 64 : index
    %316 = vector.load %arg11[%c6_68, %c64_69] : memref<16x128xf32, #tpu.memory_space<vmem>>, vector<2x32xf32>
    tpu.vector_store %arg11[%c6_68, %c64_69], %314 {strides = array<i32>} : memref<16x128xf32, #tpu.memory_space<vmem>>, vector<2x32xf32>,
    %317 = vector.extract_strided_slice %10 {offsets = [10, 0], sizes = [2, 128], strides = [1, 1]} : vector<16x256xf32> to vector<2x128xf32>
    %318 = arith.truncf %289 : vector<2x32xf32> to vector<2x32xbf16>
    %cst_70 = arith.constant dense<0.000000e+00> : vector<2x128xf32>
    %319 = tpu.matmul %318, %11, %cst_70 {dimension_numbers = #tpu.dot_dimension_numbers<[1], [0], [0], [1], [0, 0, 1, 1], [], []>} : vector<2x32xbf16>, vector<32x128xbf16>, vector<2x128xf32> -> vector<2x128xf32>
    %320 = arith.addf %317, %319 : vector<2x128xf32>
    %321 = vector.extract_strided_slice %10 {offsets = [4, 128], sizes = [2, 128], strides = [1, 1]} : vector<16x256xf32> to vector<2x128xf32>
    %322 = arith.truncf %314 : vector<2x32xf32> to vector<2x32xbf16>
    %cst_71 = arith.constant dense<0.000000e+00> : vector<2x128xf32>
    %323 = tpu.matmul %322, %12, %cst_71 {dimension_numbers = #tpu.dot_dimension_numbers<[1], [0], [0], [1], [0, 0, 1, 1], [], []>} : vector<2x32xbf16>, vector<32x128xbf16>, vector<2x128xf32> -> vector<2x128xf32>
    %324 = arith.addf %321, %323 : vector<2x128xf32>
    %325 = vector.extract_strided_slice %320 {offsets = [0, 0], sizes = [2, 32], strides = [1, 1]} : vector<2x128xf32> to vector<2x32xf32>
    %326 = arith.negf %325 : vector<2x32xf32>
    %327 = math.exp %326 : vector<2x32xf32>
    %cst_72 = arith.constant 1.000000e+00 : f32
    %328 = vector.broadcast %cst_72 : f32 to vector<2x32xf32>
    %329 = arith.addf %328, %327 : vector<2x32xf32>
    %330 = arith.divf %328, %329 : vector<2x32xf32>
    %331 = vector.extract_strided_slice %320 {offsets = [0, 32], sizes = [2, 32], strides = [1, 1]} : vector<2x128xf32> to vector<2x32xf32>
    %332 = arith.negf %331 : vector<2x32xf32>
    %333 = math.exp %332 : vector<2x32xf32>
    %cst_73 = arith.constant 1.000000e+00 : f32
    %334 = vector.broadcast %cst_73 : f32 to vector<2x32xf32>
    %335 = arith.addf %334, %333 : vector<2x32xf32>
    %336 = arith.divf %334, %335 : vector<2x32xf32>
    %337 = vector.extract_strided_slice %320 {offsets = [0, 64], sizes = [2, 32], strides = [1, 1]} : vector<2x128xf32> to vector<2x32xf32>
    %338 = math.tanh %337 : vector<2x32xf32>
    %339 = vector.extract_strided_slice %320 {offsets = [0, 96], sizes = [2, 32], strides = [1, 1]} : vector<2x128xf32> to vector<2x32xf32>
    %340 = arith.negf %339 : vector<2x32xf32>
    %341 = math.exp %340 : vector<2x32xf32>
    %cst_74 = arith.constant 1.000000e+00 : f32
    %342 = vector.broadcast %cst_74 : f32 to vector<2x32xf32>
    %343 = arith.addf %342, %341 : vector<2x32xf32>
    %344 = arith.divf %342, %343 : vector<2x32xf32>
    %345 = arith.mulf %336, %287 : vector<2x32xf32>
    %346 = arith.mulf %330, %338 : vector<2x32xf32>
    %347 = arith.addf %345, %346 : vector<2x32xf32>
    %348 = math.tanh %347 : vector<2x32xf32>
    %349 = arith.mulf %344, %348 : vector<2x32xf32>
    %350 = vector.extract_strided_slice %324 {offsets = [0, 0], sizes = [2, 32], strides = [1, 1]} : vector<2x128xf32> to vector<2x32xf32>
    %351 = arith.negf %350 : vector<2x32xf32>
    %352 = math.exp %351 : vector<2x32xf32>
    %cst_75 = arith.constant 1.000000e+00 : f32
    %353 = vector.broadcast %cst_75 : f32 to vector<2x32xf32>
    %354 = arith.addf %353, %352 : vector<2x32xf32>
    %355 = arith.divf %353, %354 : vector<2x32xf32>
    %356 = vector.extract_strided_slice %324 {offsets = [0, 32], sizes = [2, 32], strides = [1, 1]} : vector<2x128xf32> to vector<2x32xf32>
    %357 = arith.negf %356 : vector<2x32xf32>
    %358 = math.exp %357 : vector<2x32xf32>
    %cst_76 = arith.constant 1.000000e+00 : f32
    %359 = vector.broadcast %cst_76 : f32 to vector<2x32xf32>
    %360 = arith.addf %359, %358 : vector<2x32xf32>
    %361 = arith.divf %359, %360 : vector<2x32xf32>
    %362 = vector.extract_strided_slice %324 {offsets = [0, 64], sizes = [2, 32], strides = [1, 1]} : vector<2x128xf32> to vector<2x32xf32>
    %363 = math.tanh %362 : vector<2x32xf32>
    %364 = vector.extract_strided_slice %324 {offsets = [0, 96], sizes = [2, 32], strides = [1, 1]} : vector<2x128xf32> to vector<2x32xf32>
    %365 = arith.negf %364 : vector<2x32xf32>
    %366 = math.exp %365 : vector<2x32xf32>
    %cst_77 = arith.constant 1.000000e+00 : f32
    %367 = vector.broadcast %cst_77 : f32 to vector<2x32xf32>
    %368 = arith.addf %367, %366 : vector<2x32xf32>
    %369 = arith.divf %367, %368 : vector<2x32xf32>
    %370 = arith.mulf %361, %312 : vector<2x32xf32>
    %371 = arith.mulf %355, %363 : vector<2x32xf32>
    %372 = arith.addf %370, %371 : vector<2x32xf32>
    %373 = math.tanh %372 : vector<2x32xf32>
    %374 = arith.mulf %369, %373 : vector<2x32xf32>
    %c10_78 = arith.constant 10 : index
    %c32_79 = arith.constant 32 : index
    %375 = vector.load %arg11[%c10_78, %c32_79] : memref<16x128xf32, #tpu.memory_space<vmem>>, vector<2x32xf32>
    tpu.vector_store %arg11[%c10_78, %c32_79], %349 {strides = array<i32>} : memref<16x128xf32, #tpu.memory_space<vmem>>, vector<2x32xf32>,
    %c4_80 = arith.constant 4 : index
    %c64_81 = arith.constant 64 : index
    %376 = vector.load %arg11[%c4_80, %c64_81] : memref<16x128xf32, #tpu.memory_space<vmem>>, vector<2x32xf32>
    tpu.vector_store %arg11[%c4_80, %c64_81], %374 {strides = array<i32>} : memref<16x128xf32, #tpu.memory_space<vmem>>, vector<2x32xf32>,
    %377 = vector.extract_strided_slice %10 {offsets = [12, 0], sizes = [2, 128], strides = [1, 1]} : vector<16x256xf32> to vector<2x128xf32>
    %378 = arith.truncf %349 : vector<2x32xf32> to vector<2x32xbf16>
    %cst_82 = arith.constant dense<0.000000e+00> : vector<2x128xf32>
    %379 = tpu.matmul %378, %11, %cst_82 {dimension_numbers = #tpu.dot_dimension_numbers<[1], [0], [0], [1], [0, 0, 1, 1], [], []>} : vector<2x32xbf16>, vector<32x128xbf16>, vector<2x128xf32> -> vector<2x128xf32>
    %380 = arith.addf %377, %379 : vector<2x128xf32>
    %381 = vector.extract_strided_slice %10 {offsets = [2, 128], sizes = [2, 128], strides = [1, 1]} : vector<16x256xf32> to vector<2x128xf32>
    %382 = arith.truncf %374 : vector<2x32xf32> to vector<2x32xbf16>
    %cst_83 = arith.constant dense<0.000000e+00> : vector<2x128xf32>
    %383 = tpu.matmul %382, %12, %cst_83 {dimension_numbers = #tpu.dot_dimension_numbers<[1], [0], [0], [1], [0, 0, 1, 1], [], []>} : vector<2x32xbf16>, vector<32x128xbf16>, vector<2x128xf32> -> vector<2x128xf32>
    %384 = arith.addf %381, %383 : vector<2x128xf32>
    %385 = vector.extract_strided_slice %380 {offsets = [0, 0], sizes = [2, 32], strides = [1, 1]} : vector<2x128xf32> to vector<2x32xf32>
    %386 = arith.negf %385 : vector<2x32xf32>
    %387 = math.exp %386 : vector<2x32xf32>
    %cst_84 = arith.constant 1.000000e+00 : f32
    %388 = vector.broadcast %cst_84 : f32 to vector<2x32xf32>
    %389 = arith.addf %388, %387 : vector<2x32xf32>
    %390 = arith.divf %388, %389 : vector<2x32xf32>
    %391 = vector.extract_strided_slice %380 {offsets = [0, 32], sizes = [2, 32], strides = [1, 1]} : vector<2x128xf32> to vector<2x32xf32>
    %392 = arith.negf %391 : vector<2x32xf32>
    %393 = math.exp %392 : vector<2x32xf32>
    %cst_85 = arith.constant 1.000000e+00 : f32
    %394 = vector.broadcast %cst_85 : f32 to vector<2x32xf32>
    %395 = arith.addf %394, %393 : vector<2x32xf32>
    %396 = arith.divf %394, %395 : vector<2x32xf32>
    %397 = vector.extract_strided_slice %380 {offsets = [0, 64], sizes = [2, 32], strides = [1, 1]} : vector<2x128xf32> to vector<2x32xf32>
    %398 = math.tanh %397 : vector<2x32xf32>
    %399 = vector.extract_strided_slice %380 {offsets = [0, 96], sizes = [2, 32], strides = [1, 1]} : vector<2x128xf32> to vector<2x32xf32>
    %400 = arith.negf %399 : vector<2x32xf32>
    %401 = math.exp %400 : vector<2x32xf32>
    %cst_86 = arith.constant 1.000000e+00 : f32
    %402 = vector.broadcast %cst_86 : f32 to vector<2x32xf32>
    %403 = arith.addf %402, %401 : vector<2x32xf32>
    %404 = arith.divf %402, %403 : vector<2x32xf32>
    %405 = arith.mulf %396, %347 : vector<2x32xf32>
    %406 = arith.mulf %390, %398 : vector<2x32xf32>
    %407 = arith.addf %405, %406 : vector<2x32xf32>
    %408 = math.tanh %407 : vector<2x32xf32>
    %409 = arith.mulf %404, %408 : vector<2x32xf32>
    %410 = vector.extract_strided_slice %384 {offsets = [0, 0], sizes = [2, 32], strides = [1, 1]} : vector<2x128xf32> to vector<2x32xf32>
    %411 = arith.negf %410 : vector<2x32xf32>
    %412 = math.exp %411 : vector<2x32xf32>
    %cst_87 = arith.constant 1.000000e+00 : f32
    %413 = vector.broadcast %cst_87 : f32 to vector<2x32xf32>
    %414 = arith.addf %413, %412 : vector<2x32xf32>
    %415 = arith.divf %413, %414 : vector<2x32xf32>
    %416 = vector.extract_strided_slice %384 {offsets = [0, 32], sizes = [2, 32], strides = [1, 1]} : vector<2x128xf32> to vector<2x32xf32>
    %417 = arith.negf %416 : vector<2x32xf32>
    %418 = math.exp %417 : vector<2x32xf32>
    %cst_88 = arith.constant 1.000000e+00 : f32
    %419 = vector.broadcast %cst_88 : f32 to vector<2x32xf32>
    %420 = arith.addf %419, %418 : vector<2x32xf32>
    %421 = arith.divf %419, %420 : vector<2x32xf32>
    %422 = vector.extract_strided_slice %384 {offsets = [0, 64], sizes = [2, 32], strides = [1, 1]} : vector<2x128xf32> to vector<2x32xf32>
    %423 = math.tanh %422 : vector<2x32xf32>
    %424 = vector.extract_strided_slice %384 {offsets = [0, 96], sizes = [2, 32], strides = [1, 1]} : vector<2x128xf32> to vector<2x32xf32>
    %425 = arith.negf %424 : vector<2x32xf32>
    %426 = math.exp %425 : vector<2x32xf32>
    %cst_89 = arith.constant 1.000000e+00 : f32
    %427 = vector.broadcast %cst_89 : f32 to vector<2x32xf32>
    %428 = arith.addf %427, %426 : vector<2x32xf32>
    %429 = arith.divf %427, %428 : vector<2x32xf32>
    %430 = arith.mulf %421, %372 : vector<2x32xf32>
    %431 = arith.mulf %415, %423 : vector<2x32xf32>
    %432 = arith.addf %430, %431 : vector<2x32xf32>
    %433 = math.tanh %432 : vector<2x32xf32>
    %434 = arith.mulf %429, %433 : vector<2x32xf32>
    %c12_90 = arith.constant 12 : index
    %c32_91 = arith.constant 32 : index
    %435 = vector.load %arg11[%c12_90, %c32_91] : memref<16x128xf32, #tpu.memory_space<vmem>>, vector<2x32xf32>
    tpu.vector_store %arg11[%c12_90, %c32_91], %409 {strides = array<i32>} : memref<16x128xf32, #tpu.memory_space<vmem>>, vector<2x32xf32>,
    %c2_92 = arith.constant 2 : index
    %c64_93 = arith.constant 64 : index
    %436 = vector.load %arg11[%c2_92, %c64_93] : memref<16x128xf32, #tpu.memory_space<vmem>>, vector<2x32xf32>
    tpu.vector_store %arg11[%c2_92, %c64_93], %434 {strides = array<i32>} : memref<16x128xf32, #tpu.memory_space<vmem>>, vector<2x32xf32>,
    %437 = vector.extract_strided_slice %10 {offsets = [14, 0], sizes = [2, 128], strides = [1, 1]} : vector<16x256xf32> to vector<2x128xf32>
    %438 = arith.truncf %409 : vector<2x32xf32> to vector<2x32xbf16>
    %cst_94 = arith.constant dense<0.000000e+00> : vector<2x128xf32>
    %439 = tpu.matmul %438, %11, %cst_94 {dimension_numbers = #tpu.dot_dimension_numbers<[1], [0], [0], [1], [0, 0, 1, 1], [], []>} : vector<2x32xbf16>, vector<32x128xbf16>, vector<2x128xf32> -> vector<2x128xf32>
    %440 = arith.addf %437, %439 : vector<2x128xf32>
    %441 = vector.extract_strided_slice %10 {offsets = [0, 128], sizes = [2, 128], strides = [1, 1]} : vector<16x256xf32> to vector<2x128xf32>
    %442 = arith.truncf %434 : vector<2x32xf32> to vector<2x32xbf16>
    %cst_95 = arith.constant dense<0.000000e+00> : vector<2x128xf32>
    %443 = tpu.matmul %442, %12, %cst_95 {dimension_numbers = #tpu.dot_dimension_numbers<[1], [0], [0], [1], [0, 0, 1, 1], [], []>} : vector<2x32xbf16>, vector<32x128xbf16>, vector<2x128xf32> -> vector<2x128xf32>
    %444 = arith.addf %441, %443 : vector<2x128xf32>
    %445 = vector.extract_strided_slice %440 {offsets = [0, 0], sizes = [2, 32], strides = [1, 1]} : vector<2x128xf32> to vector<2x32xf32>
    %446 = arith.negf %445 : vector<2x32xf32>
    %447 = math.exp %446 : vector<2x32xf32>
    %cst_96 = arith.constant 1.000000e+00 : f32
    %448 = vector.broadcast %cst_96 : f32 to vector<2x32xf32>
    %449 = arith.addf %448, %447 : vector<2x32xf32>
    %450 = arith.divf %448, %449 : vector<2x32xf32>
    %451 = vector.extract_strided_slice %440 {offsets = [0, 32], sizes = [2, 32], strides = [1, 1]} : vector<2x128xf32> to vector<2x32xf32>
    %452 = arith.negf %451 : vector<2x32xf32>
    %453 = math.exp %452 : vector<2x32xf32>
    %cst_97 = arith.constant 1.000000e+00 : f32
    %454 = vector.broadcast %cst_97 : f32 to vector<2x32xf32>
    %455 = arith.addf %454, %453 : vector<2x32xf32>
    %456 = arith.divf %454, %455 : vector<2x32xf32>
    %457 = vector.extract_strided_slice %440 {offsets = [0, 64], sizes = [2, 32], strides = [1, 1]} : vector<2x128xf32> to vector<2x32xf32>
    %458 = math.tanh %457 : vector<2x32xf32>
    %459 = vector.extract_strided_slice %440 {offsets = [0, 96], sizes = [2, 32], strides = [1, 1]} : vector<2x128xf32> to vector<2x32xf32>
    %460 = arith.negf %459 : vector<2x32xf32>
    %461 = math.exp %460 : vector<2x32xf32>
    %cst_98 = arith.constant 1.000000e+00 : f32
    %462 = vector.broadcast %cst_98 : f32 to vector<2x32xf32>
    %463 = arith.addf %462, %461 : vector<2x32xf32>
    %464 = arith.divf %462, %463 : vector<2x32xf32>
    %465 = arith.mulf %456, %407 : vector<2x32xf32>
    %466 = arith.mulf %450, %458 : vector<2x32xf32>
    %467 = arith.addf %465, %466 : vector<2x32xf32>
    %468 = math.tanh %467 : vector<2x32xf32>
    %469 = arith.mulf %464, %468 : vector<2x32xf32>
    %470 = vector.extract_strided_slice %444 {offsets = [0, 0], sizes = [2, 32], strides = [1, 1]} : vector<2x128xf32> to vector<2x32xf32>
    %471 = arith.negf %470 : vector<2x32xf32>
    %472 = math.exp %471 : vector<2x32xf32>
    %cst_99 = arith.constant 1.000000e+00 : f32
    %473 = vector.broadcast %cst_99 : f32 to vector<2x32xf32>
    %474 = arith.addf %473, %472 : vector<2x32xf32>
    %475 = arith.divf %473, %474 : vector<2x32xf32>
    %476 = vector.extract_strided_slice %444 {offsets = [0, 32], sizes = [2, 32], strides = [1, 1]} : vector<2x128xf32> to vector<2x32xf32>
    %477 = arith.negf %476 : vector<2x32xf32>
    %478 = math.exp %477 : vector<2x32xf32>
    %cst_100 = arith.constant 1.000000e+00 : f32
    %479 = vector.broadcast %cst_100 : f32 to vector<2x32xf32>
    %480 = arith.addf %479, %478 : vector<2x32xf32>
    %481 = arith.divf %479, %480 : vector<2x32xf32>
    %482 = vector.extract_strided_slice %444 {offsets = [0, 64], sizes = [2, 32], strides = [1, 1]} : vector<2x128xf32> to vector<2x32xf32>
    %483 = math.tanh %482 : vector<2x32xf32>
    %484 = vector.extract_strided_slice %444 {offsets = [0, 96], sizes = [2, 32], strides = [1, 1]} : vector<2x128xf32> to vector<2x32xf32>
    %485 = arith.negf %484 : vector<2x32xf32>
    %486 = math.exp %485 : vector<2x32xf32>
    %cst_101 = arith.constant 1.000000e+00 : f32
    %487 = vector.broadcast %cst_101 : f32 to vector<2x32xf32>
    %488 = arith.addf %487, %486 : vector<2x32xf32>
    %489 = arith.divf %487, %488 : vector<2x32xf32>
    %490 = arith.mulf %481, %432 : vector<2x32xf32>
    %491 = arith.mulf %475, %483 : vector<2x32xf32>
    %492 = arith.addf %490, %491 : vector<2x32xf32>
    %493 = math.tanh %492 : vector<2x32xf32>
    %494 = arith.mulf %489, %493 : vector<2x32xf32>
    %c14_102 = arith.constant 14 : index
    %c32_103 = arith.constant 32 : index
    %495 = vector.load %arg11[%c14_102, %c32_103] : memref<16x128xf32, #tpu.memory_space<vmem>>, vector<2x32xf32>
    tpu.vector_store %arg11[%c14_102, %c32_103], %469 {strides = array<i32>} : memref<16x128xf32, #tpu.memory_space<vmem>>, vector<2x32xf32>,
    %c0_104 = arith.constant 0 : index
    %c64_105 = arith.constant 64 : index
    %496 = vector.load %arg11[%c0_104, %c64_105] : memref<16x128xf32, #tpu.memory_space<vmem>>, vector<2x32xf32>
    tpu.vector_store %arg11[%c0_104, %c64_105], %494 {strides = array<i32>} : memref<16x128xf32, #tpu.memory_space<vmem>>, vector<2x32xf32>,
    %c0_106 = arith.constant 0 : index
    %c0_107 = arith.constant 0 : index
    %497 = vector.load %arg11[%c0_106, %c0_107] : memref<16x128xf32, #tpu.memory_space<vmem>>, vector<16x128xf32>
    %498 = tpu.iota {dimensions = array<i32: 0>} : vector<16x1xi32>
    %c2_i32 = arith.constant 2 : i32
    %499 = vector.broadcast %c2_i32 : i32 to vector<16x1xi32>
    %500 = arith.cmpi sge, %498, %499 : vector<16x1xi32>
    %c2_i32_108 = arith.constant 2 : i32
    %501 = tpu.dynamic_rotate %497 by %c2_i32_108 dim 0 : vector<16x128xf32>, i32 -> vector<16x128xf32>
    %cst_109 = arith.constant 0.000000e+00 : f32
    %502 = vector.shape_cast %500 : vector<16x1xi1> to vector<16x1xi1>
    %503 = vector.broadcast %502 : vector<16x1xi1> to vector<16x128xi1>
    %504 = vector.broadcast %cst_109 : f32 to vector<16x128xf32>
    %505 = arith.select %503, %501, %504 : vector<16x128xi1>, vector<16x128xf32>
    %c14_i32 = arith.constant 14 : i32
    %506 = vector.broadcast %c14_i32 : i32 to vector<16x1xi32>
    %507 = arith.cmpi slt, %498, %506 : vector<16x1xi32>
    %c14_i32_110 = arith.constant 14 : i32
    %508 = tpu.dynamic_rotate %497 by %c14_i32_110 dim 0 : vector<16x128xf32>, i32 -> vector<16x128xf32>
    %cst_111 = arith.constant 0.000000e+00 : f32
    %509 = vector.shape_cast %507 : vector<16x1xi1> to vector<16x1xi1>
    %510 = vector.broadcast %509 : vector<16x1xi1> to vector<16x128xi1>
    %511 = vector.broadcast %cst_111 : f32 to vector<16x128xf32>
    %512 = arith.select %510, %508, %511 : vector<16x128xi1>, vector<16x128xf32>
    %c0_112 = arith.constant 0 : index
    %c0_113 = arith.constant 0 : index
    %c0_114 = arith.constant 0 : index
    %513 = vector.load %arg6[%c0_112, %c0_113, %c0_114] : memref<3x128x128xbf16, #tpu.memory_space<vmem>>, vector<3x128x128xbf16>
    %514 = arith.truncf %505 : vector<16x128xf32> to vector<16x128xbf16>
    %515 = vector.extract_strided_slice %513 {offsets = [0, 0, 0], sizes = [1, 128, 128], strides = [1, 1, 1]} : vector<3x128x128xbf16> to vector<1x128x128xbf16>
    %516 = vector.shape_cast %515 : vector<1x128x128xbf16> to vector<128x128xbf16>
    %cst_115 = arith.constant dense<0.000000e+00> : vector<16x128xf32>
    %517 = tpu.matmul %514, %516, %cst_115 {dimension_numbers = #tpu.dot_dimension_numbers<[1], [0], [0], [1], [0, 0, 1, 1], [], []>} : vector<16x128xbf16>, vector<128x128xbf16>, vector<16x128xf32> -> vector<16x128xf32>
    %518 = arith.truncf %497 : vector<16x128xf32> to vector<16x128xbf16>
    %519 = vector.extract_strided_slice %513 {offsets = [1, 0, 0], sizes = [1, 128, 128], strides = [1, 1, 1]} : vector<3x128x128xbf16> to vector<1x128x128xbf16>
    %520 = vector.shape_cast %519 : vector<1x128x128xbf16> to vector<128x128xbf16>
    %cst_116 = arith.constant dense<0.000000e+00> : vector<16x128xf32>
    %521 = tpu.matmul %518, %520, %cst_116 {dimension_numbers = #tpu.dot_dimension_numbers<[1], [0], [0], [1], [0, 0, 1, 1], [], []>} : vector<16x128xbf16>, vector<128x128xbf16>, vector<16x128xf32> -> vector<16x128xf32>
    %522 = arith.addf %517, %521 : vector<16x128xf32>
    %523 = arith.truncf %512 : vector<16x128xf32> to vector<16x128xbf16>
    %524 = vector.extract_strided_slice %513 {offsets = [2, 0, 0], sizes = [1, 128, 128], strides = [1, 1, 1]} : vector<3x128x128xbf16> to vector<1x128x128xbf16>
    %525 = vector.shape_cast %524 : vector<1x128x128xbf16> to vector<128x128xbf16>
    %cst_117 = arith.constant dense<0.000000e+00> : vector<16x128xf32>
    %526 = tpu.matmul %523, %525, %cst_117 {dimension_numbers = #tpu.dot_dimension_numbers<[1], [0], [0], [1], [0, 0, 1, 1], [], []>} : vector<16x128xbf16>, vector<128x128xbf16>, vector<16x128xf32> -> vector<16x128xf32>
    %527 = arith.addf %522, %526 : vector<16x128xf32>
    %c0_118 = arith.constant 0 : index
    %c0_119 = arith.constant 0 : index
    %528 = vector.load %arg7[%c0_118, %c0_119] : memref<1x128xf32, #tpu.memory_space<vmem>>, vector<1x128xf32>
    %529 = vector.broadcast %528 : vector<1x128xf32> to vector<16x128xf32>
    %530 = arith.addf %527, %529 : vector<16x128xf32>
    %cst_120 = arith.constant 0.000000e+00 : f32
    %531 = vector.broadcast %cst_120 : f32 to vector<16x128xf32>
    %532 = arith.maximumf %530, %531 : vector<16x128xf32>
    %533 = vector.extract_strided_slice %532 {offsets = [0, 0], sizes = [2, 128], strides = [1, 1]} : vector<16x128xf32> to vector<2x128xf32>
    %534 = vector.extract_strided_slice %532 {offsets = [2, 0], sizes = [2, 128], strides = [1, 1]} : vector<16x128xf32> to vector<2x128xf32>
    %535 = arith.maximumf %533, %534 : vector<2x128xf32>
    %536 = vector.extract_strided_slice %532 {offsets = [4, 0], sizes = [2, 128], strides = [1, 1]} : vector<16x128xf32> to vector<2x128xf32>
    %537 = arith.maximumf %535, %536 : vector<2x128xf32>
    %538 = vector.extract_strided_slice %532 {offsets = [6, 0], sizes = [2, 128], strides = [1, 1]} : vector<16x128xf32> to vector<2x128xf32>
    %539 = arith.maximumf %537, %538 : vector<2x128xf32>
    %540 = vector.extract_strided_slice %532 {offsets = [8, 0], sizes = [2, 128], strides = [1, 1]} : vector<16x128xf32> to vector<2x128xf32>
    %541 = arith.maximumf %539, %540 : vector<2x128xf32>
    %542 = vector.extract_strided_slice %532 {offsets = [10, 0], sizes = [2, 128], strides = [1, 1]} : vector<16x128xf32> to vector<2x128xf32>
    %543 = arith.maximumf %541, %542 : vector<2x128xf32>
    %544 = vector.extract_strided_slice %532 {offsets = [12, 0], sizes = [2, 128], strides = [1, 1]} : vector<16x128xf32> to vector<2x128xf32>
    %545 = arith.maximumf %543, %544 : vector<2x128xf32>
    %546 = vector.extract_strided_slice %532 {offsets = [14, 0], sizes = [2, 128], strides = [1, 1]} : vector<16x128xf32> to vector<2x128xf32>
    %547 = arith.maximumf %545, %546 : vector<2x128xf32>
    %c0_121 = arith.constant 0 : index
    %c0_122 = arith.constant 0 : index
    %548 = vector.load %arg8[%c0_121, %c0_122] : memref<128x128xf32, #tpu.memory_space<vmem>>, vector<128x128xf32>
    %cst_123 = arith.constant dense<0.000000e+00> : vector<2x128xf32>
    %549 = tpu.matmul %547, %548, %cst_123 {dimension_numbers = #tpu.dot_dimension_numbers<[1], [0], [0], [1], [0, 0, 1, 1], [], []>} : vector<2x128xf32>, vector<128x128xf32>, vector<2x128xf32> -> vector<2x128xf32>
    %c0_124 = arith.constant 0 : index
    %c0_125 = arith.constant 0 : index
    %550 = vector.load %arg9[%c0_124, %c0_125] : memref<1x128xf32, #tpu.memory_space<vmem>>, vector<1x128xf32>
    %551 = vector.broadcast %550 : vector<1x128xf32> to vector<2x128xf32>
    %552 = arith.addf %549, %551 : vector<2x128xf32>
    %c0_126 = arith.constant 0 : index
    %c0_127 = arith.constant 0 : index
    %c0_128 = arith.constant 0 : index
    %553 = vector.load %arg10[%c0_126, %c0_127, %c0_128] : memref<1x2x128xf32, #tpu.memory_space<vmem>>, vector<1x2x128xf32>
    %554 = vector.shape_cast %553 : vector<1x2x128xf32> to vector<2x128xf32>
    %555 = vector.shape_cast %552 : vector<2x128xf32> to vector<1x2x128xf32>
    tpu.vector_store %arg10[%c0_126, %c0_127, %c0_128], %555 {strides = array<i32>} : memref<1x2x128xf32, #tpu.memory_space<vmem>>, vector<1x2x128xf32>,
    return
  }
  func.func @transform_0(%arg0: i32) -> (i32, i32, i32) {
    %c0_i32 = arith.constant 0 : i32
    %c0_i32_0 = arith.constant 0 : i32
    %c0_i32_1 = arith.constant 0 : i32
    return %arg0, %c0_i32, %c0_i32_0 : i32, i32, i32
  }
  func.func @transform_1(%arg0: i32) -> (i32, i32) {
    %c0_i32 = arith.constant 0 : i32
    %c0_i32_0 = arith.constant 0 : i32
    %c0_i32_1 = arith.constant 0 : i32
    return %c0_i32, %c0_i32_0 : i32, i32
  }
  func.func @transform_2(%arg0: i32) -> (i32, i32) {
    %c0_i32 = arith.constant 0 : i32
    %c0_i32_0 = arith.constant 0 : i32
    %c0_i32_1 = arith.constant 0 : i32
    return %c0_i32, %c0_i32_0 : i32, i32
  }
  func.func @transform_3(%arg0: i32) -> (i32, i32) {
    %c0_i32 = arith.constant 0 : i32
    %c0_i32_0 = arith.constant 0 : i32
    %c0_i32_1 = arith.constant 0 : i32
    return %c0_i32, %c0_i32_0 : i32, i32
  }
  func.func @transform_4(%arg0: i32) -> (i32, i32) {
    %c0_i32 = arith.constant 0 : i32
    %c0_i32_0 = arith.constant 0 : i32
    %c0_i32_1 = arith.constant 0 : i32
    return %c0_i32, %c0_i32_0 : i32, i32
  }
  func.func @transform_5(%arg0: i32) -> (i32, i32, i32) {
    %c0_i32 = arith.constant 0 : i32
    %c0_i32_0 = arith.constant 0 : i32
    %c0_i32_1 = arith.constant 0 : i32
    %c0_i32_2 = arith.constant 0 : i32
    return %c0_i32, %c0_i32_0, %c0_i32_1 : i32, i32, i32
  }
  func.func @transform_6(%arg0: i32) -> (i32, i32) {
    %c0_i32 = arith.constant 0 : i32
    %c0_i32_0 = arith.constant 0 : i32
    %c0_i32_1 = arith.constant 0 : i32
    return %c0_i32, %c0_i32_0 : i32, i32
  }
  func.func @transform_7(%arg0: i32) -> (i32, i32) {
    %c0_i32 = arith.constant 0 : i32
    %c0_i32_0 = arith.constant 0 : i32
    %c0_i32_1 = arith.constant 0 : i32
    return %c0_i32, %c0_i32_0 : i32, i32
  }
  func.func @transform_8(%arg0: i32) -> (i32, i32) {
    %c0_i32 = arith.constant 0 : i32
    %c0_i32_0 = arith.constant 0 : i32
    %c0_i32_1 = arith.constant 0 : i32
    return %c0_i32, %c0_i32_0 : i32, i32
  }
  func.func @transform_9(%arg0: i32) -> (i32, i32, i32) {
    %c0_i32 = arith.constant 0 : i32
    %c0_i32_0 = arith.constant 0 : i32
    %c0_i32_1 = arith.constant 0 : i32
    return %arg0, %c0_i32, %c0_i32_0 : i32, i32, i32
  }
}

</mosaic_0001>

<bundles_post_ra>
// kernel: tpu_custom_call.1
= control target key start
LH: loop header
LB: loop body
LE: loop exit
PB: predicated region body
PF: predicated region fallthrough
CT: control target
= control target key end

     0   :  { %14 = vsyncpa [#allocation4], 0  ;;  %s3403_s0 = inlined_call_operand.hbm [shape: f32[1,16,32], index: 0, kind: input, shape index: {}]   ;;  %s3404_s1 = inlined_call_operand.hbm [shape: bf16[32,256], index: 1, kind: input, shape index: {}]   ;;  %s3405_s2 = inlined_call_operand.hbm [shape: bf16[32,128], index: 2, kind: input, shape index: {}]   ;;  %s3406_s3 = inlined_call_operand.hbm [shape: bf16[32,128], index: 3, kind: input, shape index: {}]   ;;  %s3407_s4 = inlined_call_operand.vmem [shape: f32[1,256], index: 4, kind: input, shape index: {}]   ;;  %s3408_s5 = inlined_call_operand.hbm [shape: bf16[3,128,128], index: 5, kind: input, shape index: {}]   ;;  %s3409_s6 = inlined_call_operand.vmem [shape: f32[1,128], index: 6, kind: input, shape index: {}]   ;;  %s3410_s7 = inlined_call_operand.hbm [shape: f32[128,128], index: 7, kind: input, shape index: {}]   ;;  %s3411_s8 = inlined_call_operand.vmem [shape: f32[1,128], index: 8, kind: input, shape index: {}]   ;;  %s3412_s9 = inlined_call_operand.hbm [shape: f32[1,2,128], index: 9, kind: output, shape index: {}]  }
   0x1   :  { %15 = vsyncpa [#allocation7], 0 }
   0x2   :  { %16 = vsyncpa [#allocation10], 0 }
   0x3   :  { %17 = vsyncpa [#allocation13], 0 }
   0x4   :  { %18 = vsyncpa [#allocation5], 0  ;;  %s2809_s30 = smov [#allocation6]   ;;  %s2645_s13 = scalar_lea.hbm %s3404_s1, 512 }
   0x5   :  { %s36_s10 = sshll.u32 %s2809_s30, 4  ;;  %p2646_p0 = scmp.ne.s32.totalorder %s3404_s1, %s2645_s13  ;;  %s37_s10 = int_to_ptr.vmem [resolvable:$true] %s36_s10 }
   0x6   :  { %p2649_p1 = scmp.lt.u32.totalorder %s2645_s13, %s3404_s1 }
   0x8   :  { %p2651_p2 = pnand %p2649_p1, %p2646_p0 }
   0xa   :  { %2654 = shalt.err (!%p2651_p2)
}
   0xb   :  { %s2655_s18 = scalar_lea.vmem %s37_s10, 512  ;;  %p2660_p4 = scmp.lt.s32.totalorder %s37_s10, %s37_s10 }
   0xc   :  { %p2656_p3 = scmp.ne.s32.totalorder %s37_s10, %s2655_s18  ;;  %p2661_p5 = scmp.lt.s32.totalorder %s2655_s18, %s2655_s18 }
   0xe   :  { %p2662_p6 = por %p2661_p5, %p2660_p4 }
  0x10   :  { %p2663_p7 = pnand %p2662_p6, %p2656_p3 }
  0x12   :  { %2666 = shalt.err (!%p2663_p7)
}
  0x13   :  { %s2810_s19 = smov 128   ;;  %s2811_s20 = smov 8  }
  0x14   :  { %42 = dma.hbm_to_vmem [thread:$0]  %s3404_s1, 512, %s37_s10, [#allocation7], %s2810_s19, %s2810_s19, %s2811_s20  }
  0x15   :  { %s2812_s23 = smov [#allocation9]   ;;  %s2813_s25 = smov [#allocation3]  }
  0x16   :  { %s60_s24 = sshll.u32 %s2812_s23, 4  ;;  %s24_s26 = sshll.u32 %s2813_s25, 4  ;;  %s61_s24 = int_to_ptr.vmem [resolvable:$true] %s60_s24  ;;  %s25_s26 = int_to_ptr.vmem [resolvable:$true] %s24_s26 }
  0x17   :  { %s2667_s29 = scalar_lea.hbm %s3406_s3, 256 }
  0x18   :  { %p2668_p8 = scmp.ne.s32.totalorder %s3406_s3, %s2667_s29  ;;  %p2671_p9 = scmp.lt.u32.totalorder %s2667_s29, %s3406_s3 }
  0x1a   :  { %p2673_p10 = pnand %p2671_p9, %p2668_p8 }
  0x1c   :  { %2676 = shalt.err (!%p2673_p10)
}
  0x1d   :  { %s2677_s1 = scalar_lea.vmem %s61_s24, 256  ;;  %p2682_p12 = scmp.lt.s32.totalorder %s61_s24, %s61_s24 }
  0x1e   :  { %p2678_p11 = scmp.ne.s32.totalorder %s61_s24, %s2677_s1  ;;  %p2683_p13 = scmp.lt.s32.totalorder %s2677_s1, %s2677_s1 }
  0x20   :  { %p2684_p0 = por %p2683_p13, %p2682_p12 }
  0x22   :  { %p2685_p1 = pnand %p2684_p0, %p2678_p11 }
  0x24   :  { %2688 = shalt.err (!%p2685_p1)
}
  0x25   :  { %s2814_s10 = smov 64   ;;  %s2815_s14 = smov 4  }
  0x26   :  { %66 = dma.hbm_to_vmem [thread:$0]  %s3406_s3, 256, %s61_s24, [#allocation10], %s2814_s10, %s2814_s10, %s2815_s14  }
  0x27   :  { %s2689_s21 = scalar_lea.hbm %s3403_s0, 256 }
  0x28   :  { %p2690_p2 = scmp.ne.s32.totalorder %s3403_s0, %s2689_s21  ;;  %p2693_p3 = scmp.lt.u32.totalorder %s2689_s21, %s3403_s0 }
  0x2a   :  { %p2695_p4 = pnand %p2693_p3, %p2690_p2 }
  0x2c   :  { %2698 = shalt.err (!%p2695_p4)
}
  0x2d   :  { %s2699_s28 = scalar_lea.vmem %s25_s26, 256  ;;  %p2704_p6 = scmp.lt.s32.totalorder %s25_s26, %s25_s26 }
  0x2e   :  { %p2700_p5 = scmp.ne.s32.totalorder %s25_s26, %s2699_s28  ;;  %p2705_p7 = scmp.lt.s32.totalorder %s2699_s28, %s2699_s28 }
  0x30   :  { %p2706_p8 = por %p2705_p7, %p2704_p6 }
  0x32   :  { %p2707_p9 = pnand %p2706_p8, %p2700_p5 }
  0x34   :  { %2710 = shalt.err (!%p2707_p9)
}
  0x35   :  { %30 = dma.hbm_to_vmem [thread:$0]  %s3403_s0, 256, %s25_s26, [#allocation4], %s2810_s19, %s2810_s19, %s2811_s20  }
  0x36   :  { %s2816_s29 = smov [#allocation8]   ;;  %s2817_s11 = smov [#allocation11]  }
  0x37   :  { %s48_s30 = sshll.u32 %s2816_s29, 4  ;;  %s74_s12 = sshll.u32 %s2817_s11, 4  ;;  %s49_s30 = int_to_ptr.vmem [resolvable:$true] %s48_s30  ;;  %s75_s12 = int_to_ptr.vmem [resolvable:$true] %s74_s12 }
  0x38   :  { %s2711_s15 = scalar_lea.hbm %s3405_s2, 256 }
  0x39   :  { %p2712_p10 = scmp.ne.s32.totalorder %s3405_s2, %s2711_s15  ;;  %p2715_p11 = scmp.lt.u32.totalorder %s2711_s15, %s3405_s2 }
  0x3b   :  { %p2717_p12 = pnand %p2715_p11, %p2712_p10 }
  0x3d   :  { %2720 = shalt.err (!%p2717_p12)
}
  0x3e   :  { %s2721_s0 = scalar_lea.vmem %s49_s30, 256  ;;  %p2726_p0 = scmp.lt.s32.totalorder %s49_s30, %s49_s30 }
  0x3f   :  { %p2722_p13 = scmp.ne.s32.totalorder %s49_s30, %s2721_s0  ;;  %p2727_p1 = scmp.lt.s32.totalorder %s2721_s0, %s2721_s0 }
  0x41   :  { %p2728_p2 = por %p2727_p1, %p2726_p0 }
  0x43   :  { %p2729_p3 = pnand %p2728_p2, %p2722_p13 }
  0x45   :  { %2732 = shalt.err (!%p2729_p3)
}
  0x46   :  { %54 = dma.hbm_to_vmem [thread:$0]  %s3405_s2, 256, %s49_s30, [#allocation7], %s2814_s10, %s2814_s10, %s2815_s14  }
  0x47   :  { %s2733_s27 = scalar_lea.hbm %s3408_s5, 3072 }
  0x48   :  { %p2734_p4 = scmp.ne.s32.totalorder %s3408_s5, %s2733_s27  ;;  %p2737_p5 = scmp.lt.u32.totalorder %s2733_s27, %s3408_s5 }
  0x4a   :  { %p2739_p6 = pnand %p2737_p5, %p2734_p4 }
  0x4c   :  { %2742 = shalt.err (!%p2739_p6)
}
  0x4d   :  { %s2743_s11 = scalar_lea.vmem %s75_s12, 3072  ;;  %p2748_p8 = scmp.lt.s32.totalorder %s75_s12, %s75_s12 }
  0x4e   :  { %p2744_p7 = scmp.ne.s32.totalorder %s75_s12, %s2743_s11  ;;  %p2749_p9 = scmp.lt.s32.totalorder %s2743_s11, %s2743_s11 }
  0x50   :  { %p2750_p10 = por %p2749_p9, %p2748_p8 }
  0x52   :  { %p2751_p11 = pnand %p2750_p10, %p2744_p7 }
  0x54   :  { %2754 = shalt.err (!%p2751_p11)
}
  0x55   :  { %80 = dma.hbm_to_vmem [thread:$0]  %s3408_s5, 3072, %s75_s12, [#allocation10], %s2814_s10, %s2814_s10, %s2815_s14  }
  0x56   :  { %s2818_s13 = smov [#allocation12]   ;;  %s2755_s17 = scalar_lea.hbm %s3410_s7, 2048 }
  0x57   :  { %s88_s1 = sshll.u32 %s2818_s13, 4  ;;  %p2756_p12 = scmp.ne.s32.totalorder %s3410_s7, %s2755_s17  ;;  %s89_s1 = int_to_ptr.vmem [resolvable:$true] %s88_s1 }
  0x58   :  { %p2759_p13 = scmp.lt.u32.totalorder %s2755_s17, %s3410_s7 }
  0x5a   :  { %p2761_p0 = pnand %p2759_p13, %p2756_p12 }
  0x5c   :  { %2764 = shalt.err (!%p2761_p0)
}
  0x5d   :  { %s2765_s22 = scalar_lea.vmem %s89_s1, 2048  ;;  %p2770_p2 = scmp.lt.s32.totalorder %s89_s1, %s89_s1 }
  0x5e   :  { %p2766_p1 = scmp.ne.s32.totalorder %s89_s1, %s2765_s22  ;;  %p2771_p3 = scmp.lt.s32.totalorder %s2765_s22, %s2765_s22 }
  0x60   :  { %p2772_p4 = por %p2771_p3, %p2770_p2 }
  0x62   :  { %p2773_p5 = pnand %p2772_p4, %p2766_p1 }
  0x64   :  { %2776 = shalt.err (!%p2773_p5)
}
  0x65   :  { %94 = dma.hbm_to_vmem [thread:$0]  %s3410_s7, 2048, %s89_s1, [#allocation13], %s2810_s19, %s2810_s19, %s2811_s20  }
  0x66   :  { %2799 = dma.done.wait [#allocation4], 256  }
  0x67   :  { %2800 = vsyncadd [#allocation4], 4294967040 }
  0x68   :  { %2801 = dma.done.wait [#allocation7], 768  }
  0x69   :  { %2802 = vsyncadd [#allocation7], 4294966528 }
  0x6a   :  { %2803 = dma.done.wait [#allocation10], 3328  }
  0x6b   :  { %2804 = vsyncadd [#allocation10], 4294963968 }
  0x6c   :  { %2805 = dma.done.wait [#allocation13], 2048  }
  0x6d   :  { %2806 = vsyncadd [#allocation13], 4294965248  ;;  %v2819_v0 = vmov 0.0   ;;  %v2820_v1 = vmov 0   ;;  %vm2821_vm0 = vmmov 0   ;;  %v2972_v4 = vld [vmem:[#allocation8] sm:$0xff]   ;;  %v130_v13 = vlaneseq }
  0x6e   :  { %2214 = vmatprep.subr.bf16.mxu1 %v2819_v0  ;;  %116 = vst [vmem:[#allocation2] sm:$0xff] %v2819_v0  ;;  %117 = vst [vmem:[#allocation2 + $0x8] sm:$0xff] %v2819_v0  ;;  %195 = vmatprep.mubr.bf16.mxu0 %v2820_v1  ;;  %v2479_v2 = vld [vmem:[#allocation6 + $0x4] ss:$8 sps:$4 sm:$0xff]   ;;  %v2481_v3 = vld [vmem:[#allocation6] ss:$8 sps:$4 sm:$0xff]  }
  0x6f   :  { %2218 = vmatprep.mubr.msk.bf16.mxu1 %vm2821_vm0, %v2819_v0  ;;  %163 = vmatprep.subr.bf16.mxu0 %v2479_v2  ;;  %v2483_v5 = vld [vmem:[#allocation6 + $0x14] ss:$8 sps:$4 sm:$0xff]   ;;  %v2485_v6 = vld [vmem:[#allocation6 + $0x10] ss:$8 sps:$4 sm:$0xff]   ;;  %v2975_v7 = vld [vmem:[#allocation8 + $0x8] sm:$0xff]   ;;  %vm120_vm1 = vcmask 261120  }
  0x70   :  { %164 = vmatpush1.bf16.msra.mxu0 %v2481_v3  ;;  %2215 = vmatpush3.bf16.msra.mxu1 %v2972_v4  ;;  %v118_v8 = vld [vmem:[#allocation3] sm:$0xff]  ;;  %v119_v9 = vld [vmem:[#allocation3 + $0x8] sm:$0xff]  ;;  %v3006_v14 = vshrl.u32 %v130_v13, 7  ;;  %v128_v16 = vld [vmem:[%s3407_s4] sm:$0x3]  ;;  %s2822_s4 = smov 32  }
  0x71   :  { %165 = vmatprep.subr.bf16.mxu0 %v2483_v5  ;;  %2216 = vmatprep.subr.bf16.mxu1 %v2819_v0  ;;  %121 = vst.msk [vmem:[#allocation2] sm:$0xff] %vm120_vm1, %v118_v8  ;;  %v123_v10 = vpack.c.bf16 %v119_v9, %v118_v8  ;;  %122 = vst.msk [vmem:[#allocation2 + $0x8] sm:$0xff] %vm120_vm1, %v119_v9  ;;  %v2980_v11 = vld [vmem:[#allocation9] sm:$0xff]   ;;  %v2984_v12 = vld [vmem:[#allocation9 + $0x8] sm:$0xff]   ;;  %s2823_s20 = smov 96   ;;  %vm378_vm2 = vcmask 517376  }
  0x72   :  { %v132_v15 = vsub.s32 0, %v3006_v14  ;;  %v136_v17 = vsub.s32 1, %v3006_v14  ;;  %vm547_vm3 = vcmask 519426   ;;  %vm384_vm4 = vcmask 785926   ;;  %s2826_s25 = smov [#allocation14]  }
  0x73   :  { %vm717_vm5 = vcmask 521476   ;;  %vm553_vm6 = vcmask 783876   ;;  %vm884_vm7 = vcmask 523526   ;;  %vm723_vm8 = vcmask 781826   ;;  %s2039_s27 = sshll.u32 %s2826_s25, 4  ;;  %s2040_s27 = int_to_ptr.vmem [resolvable:$true] %s2039_s27 }
  0x74   :  { %166 = vmatpush1.bf16.msra.mxu0 %v2485_v6  ;;  %2217 = vmatpush3.bf16.msra.mxu1 %v2975_v7  ;;  %v133_v18 = vrot.slane %v128_v16, %v132_v15  ;;  %v137_v19 = vrot.slane %v128_v16, %v136_v17  ;;  %vm890_vm9 = vcmask 779776   ;;  %vm1561_vm10 = vcmp.ge.s32.totalorder %v3006_v14, 2  ;;  %s2777_s28 = scalar_lea.vmem %s2040_s27, 32  ;;  %p2782_p7 = scmp.lt.s32.totalorder %s2040_s27, %s2040_s27 }
  0x75   :  { %2222 = vmatprep.subr.bf16.mxu0 %v2819_v0  ;;  %2230 = vmatprep.subr.bf16.mxu1 %v2819_v0  ;;  %vm1565_vm11 = vcmp.lt.s32.totalorder %v3006_v14, 2  ;;  %vm2824_vm12 = vmmov 1   ;;  %vm1578_vm14 = vcmp.lt.s32.totalorder %v3006_v14, 6  ;;  %p2778_p6 = scmp.ne.s32.totalorder %s2040_s27, %s2777_s28  ;;  %p2783_p8 = scmp.lt.s32.totalorder %s2777_s28, %s2777_s28 }
  0x76   :  { %vm2106_vm13 = vmpackc.low %vm2824_vm12, %vm1561_vm10 }
  0x77   :  { %2055 = vmatmul.mubr.msk.bf16.vlgmr.msra.gmra.mrb[0].mxu0 %vm120_vm1, %v123_v10  ;;  %2219 = vmatmul.mubr.bf16.vlgmr.msra.gmra.mrb[0].mxu1 %v2820_v1  ;;  %p2784_p9 = por %p2783_p8, %p2782_p7 }
  0x78   :  { %2223 = vmatpush3.bf16.msra.mxu0 %v2980_v11  ;;  %2226 = vmatprep.mubr.msk.bf16.mxu0 %vm2821_vm0, %v2819_v0 }
  0x79   :  { %2224 = vmatprep.subr.bf16.mxu0 %v2819_v0  ;;  %2231 = vmatpush3.bf16.msra.mxu1 %v2972_v4  ;;  %p2785_p10 = pnand %p2784_p9, %p2778_p6 }
  0x7a   :  { %2234 = vmatprep.mubr.msk.bf16.mxu1 %vm2821_vm0, %v2819_v0  ;;  %2232 = vmatprep.subr.bf16.mxu1 %v2819_v0 }
  0x7c   :  { %2225 = vmatpush3.bf16.msra.mxu0 %v2984_v12 }
  0x7d   :  { %2238 = vmatprep.subr.bf16.mxu0 %v2819_v0  ;;  %2233 = vmatpush3.bf16.msra.mxu1 %v2975_v7 }
  0x7e   :  { %2246 = vmatprep.subr.bf16.mxu1 %v2819_v0 }
  0x7f   :  { %2227 = vmatmul.mubr.bf16.vlgmr.msra.gmra.mrb[4].mxu0 %v2820_v1 }
  0x80   :  { %2239 = vmatpush3.bf16.msra.mxu0 %v2980_v11  ;;  %2242 = vmatprep.mubr.msk.bf16.mxu0 %vm2821_vm0, %v2819_v0 }
  0x81   :  { %2240 = vmatprep.subr.bf16.mxu0 %v2819_v0 }
  0x84   :  { %2241 = vmatpush3.bf16.msra.mxu0 %v2984_v12 }
  0x85   :  { %2254 = vmatprep.subr.bf16.mxu0 %v2819_v0 }
 0x14a   :  { %v197_v20 = vpop.f32.mrb[0].mxu0  ;;  %v263_v23 = vpop.f32.mrb[0].mxu1 }
 0x14b   :  { %v3013_v21 = vadd.f32 %v197_v20, %v133_v18  ;;  %v199_v22 = vpop.f32.mrb[1].mxu0  ;;  %v2220_v26 = vpop.f32.mrb[1].mxu1 }
 0x14c   :  { %v3015_v24 = vadd.f32 %v199_v22, %v137_v19  ;;  %v201_v25 = vpop.f32.mrb[2].mxu0  ;;  %v266_v30 = vpop.f32.mrb[2].mxu1 }
 0x14d   :  { %v3017_v27 = vadd.f32 %v201_v25, %v133_v18  ;;  %v269_v28 = vadd.f32 %v263_v23, %v3013_v21  ;;  %v203_v29 = vpop.f32.mrb[3].mxu0  ;;  %v2221_v31 = vpop.f32.mrb[3].mxu1 }
 0x14e   :  { %v3020_v33 = vadd.f32 %v203_v29, %v137_v19 }
 0x14f   :  { %2513 = vtanh.f32 %v269_v28  ;;  %v2060_v41 = vmul.f32 -1.442695, %v269_v28 }
 0x152   :  { %v316_v32 = vpop.f32.mrb[4].mxu0 }
 0x153   :  { %v323_v34 = vrot.slane %v316_v32, 2  ;;  %v2228_v35 = vpop.f32.mrb[5].mxu0 }
 0x154   :  { %v319_v36 = vpop.f32.mrb[6].mxu0 }
 0x155   :  { %v325_v37 = vadd.f32 %v323_v34, %v3020_v33  ;;  %v2229_v38 = vpop.f32.mrb[7].mxu0 }
 0x157   :  { %2515 = vtanh.f32 %v325_v37  ;;  %v2061_v42 = vmul.f32 -1.442695, %v325_v37 }
 0x158   :  { %2517 = vpow2.f32 %v2060_v41 }
 0x159   :  { %v2514_v39 = vpop.eup %2513  ;;  %2519 = vpow2.f32 %v2061_v42 }
 0x15a   :  { %335 = vrot.lane.b32.xlu0 %v2514_v39, %s2814_s10 }
 0x161   :  { %v2516_v40 = vpop.eup %2515 }
 0x162   :  { %359 = vrot.lane.b32.xlu0 %v2516_v40, %s2814_s10  ;;  %v2518_v43 = vpop.eup %2517 }
 0x163   :  { %v329_v44 = vadd.f32 1.0, %v2518_v43  ;;  %v2520_v45 = vpop.eup %2519 }
 0x164   :  { %v353_v46 = vadd.f32 1.0, %v2520_v45 }
 0x165   :  { %2521 = vrcp.f32 %v329_v44 }
 0x166   :  { %2523 = vrcp.f32 %v353_v46 }
 0x16f   :  { %v2522_v47 = vpop.eup %2521 }
 0x170   :  { %v2524_v50 = vpop.eup %2523  ;;  %v333_v53 = vmul.f32 0.0, %v2522_v47 }
 0x171   :  { %v357_v56 = vmul.f32 0.0, %v2524_v50 }
 0x1cc   :  { %v336_v48 = vpop.permute.xlu0 %335 }
 0x1cd   :  { %v338_v49 = vmul.f32 %v2522_v47, %v336_v48 }
 0x1cf   :  { %340 = vrot.lane.b32.xlu1 %v338_v49, %s2822_s4 }
 0x1d4   :  { %v360_v51 = vpop.permute.xlu0 %359 }
 0x1d5   :  { %v362_v52 = vmul.f32 %v2524_v50, %v360_v51 }
 0x1d7   :  { %364 = vrot.lane.b32.xlu1 %v362_v52, %s2822_s4 }
 0x241   :  { %v341_v54 = vpop.permute.xlu1 %340 }
 0x242   :  { %v3027_v55 = vadd.f32 %v341_v54, %v333_v53 }
 0x244   :  { %2525 = vtanh.f32 %v3027_v55  ;;  %v497_v42 = vrot.slane %v3027_v55, 6 }
 0x249   :  { %v365_v57 = vpop.permute.xlu1 %364 }
 0x24a   :  { %v3030_v58 = vadd.f32 %v365_v57, %v357_v56 }
 0x24c   :  { %2527 = vtanh.f32 %v3030_v58  ;;  %v524_v46 = vrot.slane %v3030_v58, 2 }
 0x24e   :  { %v2526_v59 = vpop.eup %2525 }
 0x24f   :  { %346 = vrot.lane.b32.xlu0 %v2526_v59, %s2814_s10 }
 0x256   :  { %v2528_v60 = vpop.eup %2527 }
 0x257   :  { %370 = vrot.lane.b32.xlu1 %v2528_v60, %s2814_s10 }
 0x2c1   :  { %v347_v61 = vpop.permute.xlu0 %346 }
 0x2c2   :  { %v3035_v62 = vmul.f32 %v2522_v47, %v347_v61 }
 0x2c4   :  { %v386_v63 = vpack.c.bf16 %v3035_v62, %v3035_v62 }
 0x2c6   :  { %388 = vrot.lane.b32.xlu0 %v386_v63, %s2822_s4 }
 0x2c9   :  { %v371_v1 = vpop.permute.xlu1 %370 }
 0x2ca   :  { %v3040_v2 = vmul.f32 %v2524_v50, %v371_v1 }
 0x2cc   :  { %v437_v3 = vpack.c.bf16 %v3040_v2, %v3040_v2 }
 0x2ce   :  { %v439_v5 = vrot.slane %v437_v3, 3 }
 0x2d0   :  { %440 = vrot.lane.b32.xlu1 %v439_v5, %s2822_s4 }
 0x338   :  { %v389_v6 = vpop.permute.xlu0 %388 }
 0x339   :  { %2235 = vmatmul.mubr.msk.bf16.vlgmr.msra.gmra.mrb[4].mxu1 %vm120_vm1, %v389_v6 }
 0x33a   :  { %2247 = vmatpush3.bf16.msra.mxu1 %v2972_v4  ;;  %2250 = vmatprep.mubr.msk.bf16.mxu1 %vm2821_vm0, %v2819_v0 }
 0x33b   :  { %2248 = vmatprep.subr.bf16.mxu1 %v2819_v0 }
 0x33e   :  { %2249 = vmatpush3.bf16.msra.mxu1 %v2975_v7 }
 0x33f   :  { %2262 = vmatprep.subr.bf16.mxu1 %v2819_v0 }
 0x342   :  { %v441_v8 = vpop.permute.xlu1 %440 }
 0x343   :  { %2243 = vmatmul.mubr.msk.bf16.vlgmr.msra.gmra.mrb[8].mxu0 %vm120_vm1, %v441_v8 }
 0x344   :  { %2255 = vmatpush3.bf16.msra.mxu0 %v2980_v11  ;;  %2258 = vmatprep.mubr.msk.bf16.mxu0 %vm2821_vm0, %v2819_v0 }
 0x345   :  { %2256 = vmatprep.subr.bf16.mxu0 %v2819_v0 }
 0x348   :  { %2257 = vmatpush3.bf16.msra.mxu0 %v2984_v12 }
 0x349   :  { %2270 = vmatprep.subr.bf16.mxu0 %v2819_v0 }
 0x40c   :  { %v427_v9 = vpop.f32.mrb[4].mxu1 }
 0x40d   :  { %v434_v10 = vrot.slane %v427_v9, 6  ;;  %v2236_v13 = vpop.f32.mrb[5].mxu1 }
 0x40e   :  { %v430_v15 = vpop.f32.mrb[6].mxu1 }
 0x40f   :  { %v436_v16 = vadd.f32 %v434_v10, %v3013_v21  ;;  %v2237_v17 = vpop.f32.mrb[7].mxu1 }
 0x411   :  { %2529 = vtanh.f32 %v436_v16  ;;  %v2064_v29 = vmul.f32 -1.442695, %v436_v16 }
 0x416   :  { %v479_v18 = vpop.f32.mrb[8].mxu0 }
 0x417   :  { %v486_v19 = vrot.slane %v479_v18, 4  ;;  %v2244_v20 = vpop.f32.mrb[9].mxu0 }
 0x418   :  { %v482_v22 = vpop.f32.mrb[10].mxu0 }
 0x419   :  { %v488_v23 = vadd.f32 %v486_v19, %v3020_v33  ;;  %v2245_v25 = vpop.f32.mrb[11].mxu0 }
 0x41b   :  { %v2530_v26 = vpop.eup %2529  ;;  %2531 = vtanh.f32 %v488_v23  ;;  %v2065_v30 = vmul.f32 -1.442695, %v488_v23 }
 0x41c   :  { %501 = vrot.lane.b32.xlu0 %v2530_v26, %s2814_s10  ;;  %2533 = vpow2.f32 %v2064_v29 }
 0x41d   :  { %2535 = vpow2.f32 %v2065_v30 }
 0x425   :  { %v2532_v28 = vpop.eup %2531 }
 0x426   :  { %528 = vrot.lane.b32.xlu1 %v2532_v28, %s2814_s10  ;;  %v2534_v31 = vpop.eup %2533 }
 0x427   :  { %v492_v32 = vadd.f32 1.0, %v2534_v31  ;;  %v2536_v34 = vpop.eup %2535 }
 0x428   :  { %v519_v35 = vadd.f32 1.0, %v2536_v34 }
 0x429   :  { %2537 = vrcp.f32 %v492_v32 }
 0x42a   :  { %2539 = vrcp.f32 %v519_v35 }
 0x433   :  { %v2538_v36 = vpop.eup %2537 }
 0x434   :  { %v2540_v39 = vpop.eup %2539  ;;  %v499_v43 = vmul.f32 %v2538_v36, %v497_v42 }
 0x435   :  { %v526_v47 = vmul.f32 %v2540_v39, %v524_v46 }
 0x48e   :  { %v502_v37 = vpop.permute.xlu0 %501 }
 0x48f   :  { %v504_v38 = vmul.f32 %v2538_v36, %v502_v37 }
 0x491   :  { %506 = vrot.lane.b32.xlu0 %v504_v38, %s2822_s4 }
 0x498   :  { %v529_v40 = vpop.permute.xlu1 %528 }
 0x499   :  { %v531_v41 = vmul.f32 %v2540_v39, %v529_v40 }
 0x49b   :  { %533 = vrot.lane.b32.xlu1 %v531_v41, %s2822_s4 }
 0x503   :  { %v507_v44 = vpop.permute.xlu0 %506 }
 0x504   :  { %v3066_v45 = vadd.f32 %v507_v44, %v499_v43 }
 0x506   :  { %2541 = vtanh.f32 %v3066_v45 }
 0x50d   :  { %v534_v48 = vpop.permute.xlu1 %533 }
 0x50e   :  { %v3070_v49 = vadd.f32 %v534_v48, %v526_v47 }
 0x510   :  { %v2542_v50 = vpop.eup %2541  ;;  %2543 = vtanh.f32 %v3070_v49  ;;  %v694_v40 = vrot.slane %v3070_v49, 2 }
 0x511   :  { %512 = vrot.lane.b32.xlu0 %v2542_v50, %s2814_s10 }
 0x51a   :  { %v2544_v51 = vpop.eup %2543 }
 0x51b   :  { %539 = vrot.lane.b32.xlu1 %v2544_v51, %s2814_s10 }
 0x583   :  { %v513_v52 = vpop.permute.xlu0 %512 }
 0x584   :  { %v3075_v53 = vmul.f32 %v2538_v36, %v513_v52  ;;  %v667_v36 = vrot.slane %v3066_v45, 6 }
 0x586   :  { %v555_v54 = vpack.c.bf16 %v3075_v53, %v3075_v53 }
 0x588   :  { %v557_v55 = vrot.slane %v555_v54, 1 }
 0x58a   :  { %558 = vrot.lane.b32.xlu0 %v557_v55, %s2822_s4 }
 0x58d   :  { %v540_v56 = vpop.permute.xlu1 %539 }
 0x58e   :  { %v3080_v57 = vmul.f32 %v2540_v39, %v540_v56 }
 0x590   :  { %v607_v58 = vpack.c.bf16 %v3080_v57, %v3080_v57 }
 0x592   :  { %v609_v59 = vrot.slane %v607_v58, 2 }
 0x594   :  { %610 = vrot.lane.b32.xlu1 %v609_v59, %s2822_s4 }
 0x5fc   :  { %v559_v60 = vpop.permute.xlu0 %558 }
 0x5fd   :  { %2251 = vmatmul.mubr.msk.bf16.vlgmr.msra.gmra.mrb[8].mxu1 %vm120_vm1, %v559_v60 }
 0x5fe   :  { %2263 = vmatpush3.bf16.msra.mxu1 %v2972_v4  ;;  %2266 = vmatprep.mubr.msk.bf16.mxu1 %vm2821_vm0, %v2819_v0 }
 0x5ff   :  { %2264 = vmatprep.subr.bf16.mxu1 %v2819_v0 }
 0x602   :  { %2265 = vmatpush3.bf16.msra.mxu1 %v2975_v7 }
 0x603   :  { %2278 = vmatprep.subr.bf16.mxu1 %v2819_v0 }
 0x606   :  { %v611_v61 = vpop.permute.xlu1 %610 }
 0x607   :  { %2259 = vmatmul.mubr.msk.bf16.vlgmr.msra.gmra.mrb[12].mxu0 %vm120_vm1, %v611_v61 }
 0x608   :  { %2271 = vmatpush3.bf16.msra.mxu0 %v2980_v11  ;;  %2274 = vmatprep.mubr.msk.bf16.mxu0 %vm2821_vm0, %v2819_v0 }
 0x609   :  { %2272 = vmatprep.subr.bf16.mxu0 %v2819_v0 }
 0x60c   :  { %2273 = vmatpush3.bf16.msra.mxu0 %v2984_v12 }
 0x60d   :  { %2286 = vmatprep.subr.bf16.mxu0 %v2819_v0 }
 0x6d0   :  { %v597_v63 = vpop.f32.mrb[8].mxu1 }
 0x6d1   :  { %v604_v1 = vrot.slane %v597_v63, 4  ;;  %v2252_v3 = vpop.f32.mrb[9].mxu1 }
 0x6d2   :  { %v600_v5 = vpop.f32.mrb[10].mxu1 }
 0x6d3   :  { %v606_v6 = vadd.f32 %v604_v1, %v3013_v21  ;;  %v2253_v8 = vpop.f32.mrb[11].mxu1 }
 0x6d5   :  { %2545 = vtanh.f32 %v606_v6  ;;  %v2068_v20 = vmul.f32 -1.442695, %v606_v6 }
 0x6da   :  { %v649_v9 = vpop.f32.mrb[12].mxu0 }
 0x6db   :  { %v656_v10 = vrot.slane %v649_v9, 6  ;;  %v2260_v13 = vpop.f32.mrb[13].mxu0 }
 0x6dc   :  { %v652_v15 = vpop.f32.mrb[14].mxu0 }
 0x6dd   :  { %v658_v16 = vadd.f32 %v656_v10, %v3020_v33  ;;  %v2261_v17 = vpop.f32.mrb[15].mxu0 }
 0x6df   :  { %v2546_v18 = vpop.eup %2545  ;;  %2547 = vtanh.f32 %v658_v16  ;;  %v2069_v22 = vmul.f32 -1.442695, %v658_v16 }
 0x6e0   :  { %671 = vrot.lane.b32.xlu0 %v2546_v18, %s2814_s10  ;;  %2549 = vpow2.f32 %v2068_v20 }
 0x6e1   :  { %2551 = vpow2.f32 %v2069_v22 }
 0x6e9   :  { %v2548_v19 = vpop.eup %2547 }
 0x6ea   :  { %698 = vrot.lane.b32.xlu1 %v2548_v19, %s2814_s10  ;;  %v2550_v23 = vpop.eup %2549 }
 0x6eb   :  { %v662_v25 = vadd.f32 1.0, %v2550_v23  ;;  %v2552_v26 = vpop.eup %2551 }
 0x6ec   :  { %v689_v28 = vadd.f32 1.0, %v2552_v26 }
 0x6ed   :  { %2553 = vrcp.f32 %v662_v25 }
 0x6ee   :  { %2555 = vrcp.f32 %v689_v28 }
 0x6f7   :  { %v2554_v29 = vpop.eup %2553 }
 0x6f8   :  { %v2556_v32 = vpop.eup %2555  ;;  %v669_v37 = vmul.f32 %v2554_v29, %v667_v36 }
 0x6f9   :  { %v696_v41 = vmul.f32 %v2556_v32, %v694_v40 }
 0x752   :  { %v672_v30 = vpop.permute.xlu0 %671 }
 0x753   :  { %v674_v31 = vmul.f32 %v2554_v29, %v672_v30 }
 0x755   :  { %676 = vrot.lane.b32.xlu0 %v674_v31, %s2822_s4 }
 0x75c   :  { %v699_v34 = vpop.permute.xlu1 %698 }
 0x75d   :  { %v701_v35 = vmul.f32 %v2556_v32, %v699_v34 }
 0x75f   :  { %703 = vrot.lane.b32.xlu1 %v701_v35, %s2822_s4 }
 0x7c7   :  { %v677_v38 = vpop.permute.xlu0 %676 }
 0x7c8   :  { %v3106_v39 = vadd.f32 %v677_v38, %v669_v37 }
 0x7ca   :  { %2557 = vtanh.f32 %v3106_v39  ;;  %v834_v28 = vrot.slane %v3106_v39, 6 }
 0x7d1   :  { %v704_v42 = vpop.permute.xlu1 %703 }
 0x7d2   :  { %v3110_v43 = vadd.f32 %v704_v42, %v696_v41 }
 0x7d4   :  { %v2558_v44 = vpop.eup %2557  ;;  %2559 = vtanh.f32 %v3110_v43 }
 0x7d5   :  { %682 = vrot.lane.b32.xlu0 %v2558_v44, %s2814_s10 }
 0x7de   :  { %v2560_v46 = vpop.eup %2559 }
 0x7df   :  { %709 = vrot.lane.b32.xlu1 %v2560_v46, %s2814_s10 }
 0x847   :  { %v683_v45 = vpop.permute.xlu0 %682 }
 0x848   :  { %v3115_v47 = vmul.f32 %v2554_v29, %v683_v45 }
 0x84a   :  { %v725_v48 = vpack.c.bf16 %v3115_v47, %v3115_v47 }
 0x84c   :  { %v727_v50 = vrot.slane %v725_v48, 2 }
 0x84e   :  { %728 = vrot.lane.b32.xlu0 %v727_v50, %s2822_s4 }
 0x851   :  { %v710_v49 = vpop.permute.xlu1 %709 }
 0x852   :  { %v3120_v51 = vmul.f32 %v2556_v32, %v710_v49  ;;  %v861_v32 = vrot.slane %v3110_v43, 2 }
 0x854   :  { %v777_v52 = vpack.c.bf16 %v3120_v51, %v3120_v51 }
 0x856   :  { %v779_v54 = vrot.slane %v777_v52, 1 }
 0x858   :  { %780 = vrot.lane.b32.xlu1 %v779_v54, %s2822_s4 }
 0x8c0   :  { %v729_v55 = vpop.permute.xlu0 %728 }
 0x8c1   :  { %2267 = vmatmul.mubr.msk.bf16.vlgmr.msra.gmra.mrb[12].mxu1 %vm120_vm1, %v729_v55 }
 0x8c2   :  { %2279 = vmatpush3.bf16.msra.mxu1 %v2972_v4  ;;  %2282 = vmatprep.mubr.msk.bf16.mxu1 %vm2821_vm0, %v2819_v0 }
 0x8c3   :  { %2280 = vmatprep.subr.bf16.mxu1 %v2819_v0 }
 0x8c6   :  { %2281 = vmatpush3.bf16.msra.mxu1 %v2975_v7 }
 0x8c7   :  { %2294 = vmatprep.subr.bf16.mxu1 %v2819_v0 }
 0x8ca   :  { %v781_v56 = vpop.permute.xlu1 %780 }
 0x8cb   :  { %2275 = vmatmul.mubr.msk.bf16.vlgmr.msra.gmra.mrb[16].mxu0 %vm120_vm1, %v781_v56 }
 0x8cc   :  { %2287 = vmatpush3.bf16.msra.mxu0 %v2980_v11  ;;  %2290 = vmatprep.mubr.msk.bf16.mxu0 %vm2821_vm0, %v2819_v0 }
 0x8cd   :  { %2288 = vmatprep.subr.bf16.mxu0 %v2819_v0 }
 0x8d0   :  { %2289 = vmatpush3.bf16.msra.mxu0 %v2984_v12 }
 0x8d1   :  { %2302 = vmatprep.subr.bf16.mxu0 %v2819_v0 }
 0x994   :  { %v767_v58 = vpop.f32.mrb[12].mxu1 }
 0x995   :  { %v774_v59 = vrot.slane %v767_v58, 2  ;;  %v2268_v60 = vpop.f32.mrb[13].mxu1 }
 0x996   :  { %v770_v61 = vpop.f32.mrb[14].mxu1 }
 0x997   :  { %v776_v63 = vadd.f32 %v774_v59, %v3013_v21  ;;  %v2269_v1 = vpop.f32.mrb[15].mxu1 }
 0x999   :  { %2561 = vtanh.f32 %v776_v63  ;;  %v2072_v15 = vmul.f32 -1.442695, %v776_v63 }
 0x99e   :  { %v819_v3 = vpop.f32.mrb[16].mxu0 }
 0x99f   :  { %v825_v5 = vadd.f32 %v819_v3, %v3020_v33  ;;  %v2276_v6 = vpop.f32.mrb[17].mxu0 }
 0x9a0   :  { %v822_v8 = vpop.f32.mrb[18].mxu0 }
 0x9a1   :  { %2563 = vtanh.f32 %v825_v5  ;;  %v2277_v9 = vpop.f32.mrb[19].mxu0  ;;  %v2073_v16 = vmul.f32 -1.442695, %v825_v5 }
 0x9a2   :  { %2565 = vpow2.f32 %v2072_v15 }
 0x9a3   :  { %v2562_v10 = vpop.eup %2561  ;;  %2567 = vpow2.f32 %v2073_v16 }
 0x9a4   :  { %838 = vrot.lane.b32.xlu0 %v2562_v10, %s2814_s10 }
 0x9ab   :  { %v2564_v13 = vpop.eup %2563 }
 0x9ac   :  { %865 = vrot.lane.b32.xlu1 %v2564_v13, %s2814_s10  ;;  %v2566_v21 = vpop.eup %2565 }
 0x9ad   :  { %v829_v17 = vadd.f32 1.0, %v2566_v21  ;;  %v2568_v18 = vpop.eup %2567 }
 0x9ae   :  { %v856_v19 = vadd.f32 1.0, %v2568_v18 }
 0x9af   :  { %2569 = vrcp.f32 %v829_v17 }
 0x9b0   :  { %2571 = vrcp.f32 %v856_v19 }
 0x9b9   :  { %v2570_v33 = vpop.eup %2569 }
 0x9ba   :  { %v2572_v23 = vpop.eup %2571  ;;  %v836_v29 = vmul.f32 %v2570_v33, %v834_v28 }
 0x9bb   :  { %v863_v34 = vmul.f32 %v2572_v23, %v861_v32 }
 0xa16   :  { %v839_v20 = vpop.permute.xlu0 %838 }
 0xa17   :  { %v841_v22 = vmul.f32 %v2570_v33, %v839_v20 }
 0xa19   :  { %843 = vrot.lane.b32.xlu0 %v841_v22, %s2822_s4 }
 0xa1e   :  { %v866_v25 = vpop.permute.xlu1 %865 }
 0xa1f   :  { %v868_v26 = vmul.f32 %v2572_v23, %v866_v25 }
 0xa21   :  { %870 = vrot.lane.b32.xlu1 %v868_v26, %s2822_s4 }
 0xa8b   :  { %v844_v30 = vpop.permute.xlu0 %843 }
 0xa8c   :  { %v3146_v31 = vadd.f32 %v844_v30, %v836_v29 }
 0xa8e   :  { %2573 = vtanh.f32 %v3146_v31 }
 0xa93   :  { %v871_v35 = vpop.permute.xlu1 %870 }
 0xa94   :  { %v3150_v36 = vadd.f32 %v871_v35, %v863_v34 }
 0xa96   :  { %2575 = vtanh.f32 %v3150_v36  ;;  %v1027_v25 = vrot.slane %v3150_v36, 2 }
 0xa98   :  { %v2574_v37 = vpop.eup %2573 }
 0xa99   :  { %849 = vrot.lane.b32.xlu0 %v2574_v37, %s2814_s10 }
 0xaa0   :  { %v2576_v38 = vpop.eup %2575 }
 0xaa1   :  { %876 = vrot.lane.b32.xlu1 %v2576_v38, %s2814_s10 }
 0xb0b   :  { %v850_v39 = vpop.permute.xlu0 %849 }
 0xb0c   :  { %v3155_v40 = vmul.f32 %v2570_v33, %v850_v39  ;;  %v1000_v33 = vrot.slane %v3146_v31, 6 }
 0xb0e   :  { %v892_v41 = vpack.c.bf16 %v3155_v40, %v3155_v40 }
 0xb10   :  { %v894_v42 = vrot.slane %v892_v41, 3 }
 0xb12   :  { %895 = vrot.lane.b32.xlu1 %v894_v42, %s2822_s4 }
 0xb13   :  { %v877_v43 = vpop.permute.xlu1 %876 }
 0xb14   :  { %v3160_v44 = vmul.f32 %v2572_v23, %v877_v43 }
 0xb16   :  { %v941_v46 = vpack.c.bf16 %v3160_v44, %v3160_v44 }
 0xb18   :  { %943 = vrot.lane.b32.xlu0 %v941_v46, %s2822_s4 }
 0xb84   :  { %v896_v45 = vpop.permute.xlu1 %895 }
 0xb85   :  { %2283 = vmatmul.mubr.msk.bf16.vlgmr.msra.gmra.mrb[16].mxu1 %vm120_vm1, %v896_v45 }
 0xb86   :  { %2295 = vmatpush3.bf16.msra.mxu1 %v2972_v4  ;;  %2298 = vmatprep.mubr.msk.bf16.mxu1 %vm2821_vm0, %v2819_v0 }
 0xb87   :  { %2296 = vmatprep.subr.bf16.mxu1 %v2819_v0 }
 0xb8a   :  { %v944_v48 = vpop.permute.xlu0 %943  ;;  %2297 = vmatpush3.bf16.msra.mxu1 %v2975_v7 }
 0xb8b   :  { %2291 = vmatmul.mubr.msk.bf16.vlgmr.msra.gmra.mrb[20].mxu0 %vm120_vm1, %v944_v48  ;;  %2310 = vmatprep.subr.bf16.mxu1 %v2819_v0 }
 0xb8c   :  { %2303 = vmatpush3.bf16.msra.mxu0 %v2980_v11  ;;  %2306 = vmatprep.mubr.msk.bf16.mxu0 %vm2821_vm0, %v2819_v0 }
 0xb8d   :  { %2304 = vmatprep.subr.bf16.mxu0 %v2819_v0 }
 0xb90   :  { %2305 = vmatpush3.bf16.msra.mxu0 %v2984_v12 }
 0xb91   :  { %2318 = vmatprep.subr.bf16.mxu0 %v2819_v0 }
 0xc58   :  { %v934_v50 = vpop.f32.mrb[16].mxu1 }
 0xc59   :  { %v940_v49 = vadd.f32 %v934_v50, %v3017_v27  ;;  %v2284_v52 = vpop.f32.mrb[17].mxu1 }
 0xc5a   :  { %v937_v54 = vpop.f32.mrb[18].mxu1 }
 0xc5b   :  { %2577 = vtanh.f32 %v940_v49  ;;  %v2285_v55 = vpop.f32.mrb[19].mxu1  ;;  %v2076_v5 = vmul.f32 -1.442695, %v940_v49 }
 0xc5e   :  { %v982_v56 = vpop.f32.mrb[20].mxu0 }
 0xc5f   :  { %v989_v58 = vrot.slane %v982_v56, 2  ;;  %v2292_v59 = vpop.f32.mrb[21].mxu0 }
 0xc60   :  { %v985_v60 = vpop.f32.mrb[22].mxu0 }
 0xc61   :  { %v991_v61 = vadd.f32 %v989_v58, %v3015_v24  ;;  %v2293_v63 = vpop.f32.mrb[23].mxu0 }
 0xc63   :  { %2579 = vtanh.f32 %v991_v61  ;;  %v2077_v6 = vmul.f32 -1.442695, %v991_v61 }
 0xc64   :  { %2581 = vpow2.f32 %v2076_v5 }
 0xc65   :  { %v2578_v1 = vpop.eup %2577  ;;  %2583 = vpow2.f32 %v2077_v6 }
 0xc66   :  { %1004 = vrot.lane.b32.xlu0 %v2578_v1, %s2814_s10 }
 0xc6d   :  { %v2580_v3 = vpop.eup %2579 }
 0xc6e   :  { %1031 = vrot.lane.b32.xlu1 %v2580_v3, %s2814_s10  ;;  %v2582_v8 = vpop.eup %2581 }
 0xc6f   :  { %v995_v9 = vadd.f32 1.0, %v2582_v8  ;;  %v2584_v10 = vpop.eup %2583 }
 0xc70   :  { %v1022_v13 = vadd.f32 1.0, %v2584_v10 }
 0xc71   :  { %2585 = vrcp.f32 %v995_v9 }
 0xc72   :  { %2587 = vrcp.f32 %v1022_v13 }
 0xc7b   :  { %v2586_v15 = vpop.eup %2585 }
 0xc7c   :  { %v2588_v17 = vpop.eup %2587  ;;  %v1002_v20 = vmul.f32 %v2586_v15, %v1000_v33 }
 0xc7d   :  { %v1029_v26 = vmul.f32 %v2588_v17, %v1027_v25 }
 0xcd8   :  { %v1005_v16 = vpop.permute.xlu0 %1004 }
 0xcd9   :  { %v1007_v21 = vmul.f32 %v2586_v15, %v1005_v16 }
 0xcdb   :  { %1009 = vrot.lane.b32.xlu0 %v1007_v21, %s2822_s4 }
 0xce0   :  { %v1032_v18 = vpop.permute.xlu1 %1031 }
 0xce1   :  { %v1034_v19 = vmul.f32 %v2588_v17, %v1032_v18 }
 0xce3   :  { %1036 = vrot.lane.b32.xlu1 %v1034_v19, %s2822_s4 }
 0xd4d   :  { %v1010_v22 = vpop.permute.xlu0 %1009 }
 0xd4e   :  { %v3186_v23 = vadd.f32 %v1010_v22, %v1002_v20 }
 0xd50   :  { %2589 = vtanh.f32 %v3186_v23  ;;  %v1167_v13 = vrot.slane %v3186_v23, 6 }
 0xd55   :  { %v1037_v28 = vpop.permute.xlu1 %1036 }
 0xd56   :  { %v3190_v29 = vadd.f32 %v1037_v28, %v1029_v26 }
 0xd58   :  { %2591 = vtanh.f32 %v3190_v29 }
 0xd5a   :  { %v2590_v30 = vpop.eup %2589 }
 0xd5b   :  { %1015 = vrot.lane.b32.xlu0 %v2590_v30, %s2814_s10 }
 0xd62   :  { %v2592_v32 = vpop.eup %2591 }
 0xd63   :  { %1042 = vrot.lane.b32.xlu1 %v2592_v32, %s2814_s10 }
 0xdcd   :  { %v1016_v31 = vpop.permute.xlu0 %1015 }
 0xdce   :  { %v3195_v34 = vmul.f32 %v2586_v15, %v1016_v31 }
 0xdd0   :  { %v1056_v35 = vpack.c.bf16 %v3195_v34, %v3195_v34 }
 0xdd2   :  { %1058 = vrot.lane.b32.xlu0 %v1056_v35, %s2822_s4 }
 0xdd5   :  { %v1043_v36 = vpop.permute.xlu1 %1042 }
 0xdd6   :  { %v3200_v37 = vmul.f32 %v2588_v17, %v1043_v36  ;;  %v1194_v17 = vrot.slane %v3190_v29, 2  ;;  %v2641_v36 = vld [vmem:[#allocation8] sm:$0xff]  }
 0xdd8   :  { %v1107_v38 = vpack.c.bf16 %v3200_v37, %v3200_v37 }
 0xdda   :  { %v1109_v39 = vrot.slane %v1107_v38, 3  ;;  %v2642_v38 = vld [vmem:[#allocation8 + $0x8] sm:$0xff]  }
 0xddc   :  { %1110 = vrot.lane.b32.xlu1 %v1109_v39, %s2822_s4 }
 0xe44   :  { %v1059_v41 = vpop.permute.xlu0 %1058 }
 0xe45   :  { %2299 = vmatmul.mubr.msk.bf16.vlgmr.msra.gmra.mrb[20].mxu1 %vm120_vm1, %v1059_v41  ;;  %v2643_v41 = vld [vmem:[#allocation9] sm:$0xff]  }
 0xe46   :  { %2311 = vmatpush3.bf16.msra.mxu1 %v2972_v4  ;;  %2314 = vmatprep.mubr.msk.bf16.mxu1 %vm2821_vm0, %v2819_v0 }
 0xe47   :  { %2312 = vmatprep.subr.bf16.mxu1 %v2819_v0 }
 0xe4a   :  { %2313 = vmatpush3.bf16.msra.mxu1 %v2975_v7 }
 0xe4b   :  { %2326 = vmatprep.subr.bf16.mxu1 %v2819_v0 }
 0xe4e   :  { %v1111_v42 = vpop.permute.xlu1 %1110 }
 0xe4f   :  { %2307 = vmatmul.mubr.msk.bf16.vlgmr.msra.gmra.mrb[24].mxu0 %vm120_vm1, %v1111_v42  ;;  %v2644_v42 = vld [vmem:[#allocation9 + $0x8] sm:$0xff]  }
 0xe50   :  { %2319 = vmatpush3.bf16.msra.mxu0 %v2980_v11  ;;  %2322 = vmatprep.mubr.msk.bf16.mxu0 %vm2821_vm0, %v2819_v0 }
 0xe51   :  { %2320 = vmatprep.subr.bf16.mxu0 %v2819_v0 }
 0xe54   :  { %2321 = vmatpush3.bf16.msra.mxu0 %v2984_v12 }
 0xe55   :  { %2334 = vmatprep.subr.bf16.mxu0 %v2819_v0 }
 0xf18   :  { %v1097_v4 = vpop.f32.mrb[20].mxu1 }
 0xf19   :  { %v1104_v43 = vrot.slane %v1097_v4, 6  ;;  %v2300_v46 = vpop.f32.mrb[21].mxu1 }
 0xf1a   :  { %v1100_v7 = vpop.f32.mrb[22].mxu1 }
 0xf1b   :  { %v1106_v45 = vadd.f32 %v1104_v43, %v3017_v27  ;;  %v2301_v48 = vpop.f32.mrb[23].mxu1 }
 0xf1d   :  { %2593 = vtanh.f32 %v1106_v45  ;;  %v2080_v58 = vmul.f32 -1.442695, %v1106_v45 }
 0xf22   :  { %v1149_v50 = vpop.f32.mrb[24].mxu0 }
 0xf23   :  { %v1156_v49 = vrot.slane %v1149_v50, 4  ;;  %v2308_v11 = vpop.f32.mrb[25].mxu0 }
 0xf24   :  { %v1152_v52 = vpop.f32.mrb[26].mxu0 }
 0xf25   :  { %v1158_v54 = vadd.f32 %v1156_v49, %v3015_v24  ;;  %v2309_v55 = vpop.f32.mrb[27].mxu0 }
 0xf27   :  { %v2594_v56 = vpop.eup %2593  ;;  %2595 = vtanh.f32 %v1158_v54  ;;  %v2081_v59 = vmul.f32 -1.442695, %v1158_v54 }
 0xf28   :  { %1171 = vrot.lane.b32.xlu0 %v2594_v56, %s2814_s10  ;;  %2597 = vpow2.f32 %v2080_v58 }
 0xf29   :  { %2599 = vpow2.f32 %v2081_v59 }
 0xf31   :  { %v2596_v12 = vpop.eup %2595 }
 0xf32   :  { %1198 = vrot.lane.b32.xlu1 %v2596_v12, %s2814_s10  ;;  %v2598_v60 = vpop.eup %2597 }
 0xf33   :  { %v1162_v61 = vadd.f32 1.0, %v2598_v60  ;;  %v2600_v63 = vpop.eup %2599 }
 0xf34   :  { %v1189_v1 = vadd.f32 1.0, %v2600_v63 }
 0xf35   :  { %2601 = vrcp.f32 %v1162_v61 }
 0xf36   :  { %2603 = vrcp.f32 %v1189_v1 }
 0xf3f   :  { %v2602_v3 = vpop.eup %2601 }
 0xf40   :  { %v2604_v8 = vpop.eup %2603  ;;  %v1169_v15 = vmul.f32 %v2602_v3, %v1167_v13 }
 0xf41   :  { %v1196_v18 = vmul.f32 %v2604_v8, %v1194_v17 }
 0xf9a   :  { %v1172_v5 = vpop.permute.xlu0 %1171 }
 0xf9b   :  { %v1174_v6 = vmul.f32 %v2602_v3, %v1172_v5 }
 0xf9d   :  { %1176 = vrot.lane.b32.xlu0 %v1174_v6, %s2822_s4 }
 0xfa4   :  { %v1199_v9 = vpop.permute.xlu1 %1198 }
 0xfa5   :  { %v1201_v10 = vmul.f32 %v2604_v8, %v1199_v9 }
 0xfa7   :  { %1203 = vrot.lane.b32.xlu1 %v1201_v10, %s2822_s4 }
0x100f   :  { %v1177_v16 = vpop.permute.xlu0 %1176 }
0x1010   :  { %v3226_v21 = vadd.f32 %v1177_v16, %v1169_v15 }
0x1012   :  { %2605 = vtanh.f32 %v3226_v21  ;;  %v1335_v13 = vrot.slane %v3226_v21, 6 }
0x1019   :  { %v1204_v19 = vpop.permute.xlu1 %1203 }
0x101a   :  { %v3230_v33 = vadd.f32 %v1204_v19, %v1196_v18 }
0x101c   :  { %v2606_v20 = vpop.eup %2605  ;;  %2607 = vtanh.f32 %v3230_v33  ;;  %v1362_v18 = vrot.slane %v3230_v33, 2 }
0x101d   :  { %1182 = vrot.lane.b32.xlu0 %v2606_v20, %s2814_s10 }
0x1026   :  { %v2608_v22 = vpop.eup %2607 }
0x1027   :  { %1209 = vrot.lane.b32.xlu1 %v2608_v22, %s2814_s10 }
0x108f   :  { %v1183_v23 = vpop.permute.xlu0 %1182 }
0x1090   :  { %v3235_v25 = vmul.f32 %v2602_v3, %v1183_v23 }
0x1092   :  { %v1223_v26 = vpack.c.bf16 %v3235_v25, %v3235_v25 }
0x1094   :  { %v1225_v28 = vrot.slane %v1223_v26, 1 }
0x1096   :  { %1226 = vrot.lane.b32.xlu0 %v1225_v28, %s2822_s4 }
0x1099   :  { %v1210_v29 = vpop.permute.xlu1 %1209 }
0x109a   :  { %v3240_v30 = vmul.f32 %v2604_v8, %v1210_v29 }
0x109c   :  { %v1275_v32 = vpack.c.bf16 %v3240_v30, %v3240_v30 }
0x109e   :  { %v1277_v31 = vrot.slane %v1275_v32, 2 }
0x10a0   :  { %1278 = vrot.lane.b32.xlu1 %v1277_v31, %s2822_s4 }
0x1108   :  { %v1227_v35 = vpop.permute.xlu0 %1226 }
0x1109   :  { %2315 = vmatmul.mubr.msk.bf16.vlgmr.msra.gmra.mrb[24].mxu1 %vm120_vm1, %v1227_v35 }
0x110a   :  { %2327 = vmatpush3.bf16.msra.mxu1 %v2641_v36  ;;  %2330 = vmatprep.mubr.msk.bf16.mxu1 %vm2821_vm0, %v2819_v0 }
0x110b   :  { %2328 = vmatprep.subr.bf16.mxu1 %v2819_v0 }
0x110e   :  { %2329 = vmatpush3.bf16.msra.mxu1 %v2642_v38 }
0x110f   :  { %2342 = vmatprep.subr.bf16.mxu1 %v2819_v0 }
0x1112   :  { %v1279_v39 = vpop.permute.xlu1 %1278 }
0x1113   :  { %2323 = vmatmul.mubr.msk.bf16.vlgmr.msra.gmra.mrb[28].mxu0 %vm120_vm1, %v1279_v39 }
0x1114   :  { %2335 = vmatpush3.bf16.msra.mxu0 %v2643_v41  ;;  %2338 = vmatprep.mubr.msk.bf16.mxu0 %vm2821_vm0, %v2819_v0 }
0x1115   :  { %2336 = vmatprep.subr.bf16.mxu0 %v2819_v0 }
0x1118   :  { %2337 = vmatpush3.bf16.msra.mxu0 %v2644_v42 }
0x1119   :  { %2362 = vmatprep.subr.bf16.mxu0 %v2819_v0 }
0x11dc   :  { %v1265_v4 = vpop.f32.mrb[24].mxu1 }
0x11dd   :  { %v1272_v43 = vrot.slane %v1265_v4, 4  ;;  %v2316_v46 = vpop.f32.mrb[25].mxu1 }
0x11de   :  { %v1268_v7 = vpop.f32.mrb[26].mxu1 }
0x11df   :  { %v1274_v45 = vadd.f32 %v1272_v43, %v3017_v27  ;;  %v2317_v48 = vpop.f32.mrb[27].mxu1 }
0x11e1   :  { %2609 = vtanh.f32 %v1274_v45  ;;  %v2084_v58 = vmul.f32 -1.442695, %v1274_v45 }
0x11e6   :  { %v1317_v50 = vpop.f32.mrb[28].mxu0 }
0x11e7   :  { %v1324_v49 = vrot.slane %v1317_v50, 6  ;;  %v2324_v11 = vpop.f32.mrb[29].mxu0 }
0x11e8   :  { %v1320_v52 = vpop.f32.mrb[30].mxu0 }
0x11e9   :  { %v1326_v54 = vadd.f32 %v1324_v49, %v3015_v24  ;;  %v2325_v55 = vpop.f32.mrb[31].mxu0 }
0x11eb   :  { %v2610_v56 = vpop.eup %2609  ;;  %2611 = vtanh.f32 %v1326_v54  ;;  %v2085_v59 = vmul.f32 -1.442695, %v1326_v54 }
0x11ec   :  { %1339 = vrot.lane.b32.xlu0 %v2610_v56, %s2814_s10  ;;  %2613 = vpow2.f32 %v2084_v58 }
0x11ed   :  { %2615 = vpow2.f32 %v2085_v59 }
0x11f5   :  { %v2612_v12 = vpop.eup %2611 }
0x11f6   :  { %1366 = vrot.lane.b32.xlu1 %v2612_v12, %s2814_s10  ;;  %v2614_v60 = vpop.eup %2613 }
0x11f7   :  { %v1330_v61 = vadd.f32 1.0, %v2614_v60  ;;  %v2616_v63 = vpop.eup %2615 }
0x11f8   :  { %v1357_v1 = vadd.f32 1.0, %v2616_v63 }
0x11f9   :  { %2617 = vrcp.f32 %v1330_v61 }
0x11fa   :  { %2619 = vrcp.f32 %v1357_v1 }
0x1203   :  { %v2618_v3 = vpop.eup %2617 }
0x1204   :  { %v2620_v8 = vpop.eup %2619  ;;  %v1337_v15 = vmul.f32 %v2618_v3, %v1335_v13 }
0x1205   :  { %v1364_v19 = vmul.f32 %v2620_v8, %v1362_v18 }
0x125e   :  { %v1340_v5 = vpop.permute.xlu0 %1339 }
0x125f   :  { %v1342_v6 = vmul.f32 %v2618_v3, %v1340_v5 }
0x1261   :  { %1344 = vrot.lane.b32.xlu0 %v1342_v6, %s2822_s4 }
0x1268   :  { %v1367_v9 = vpop.permute.xlu1 %1366 }
0x1269   :  { %v1369_v10 = vmul.f32 %v2620_v8, %v1367_v9 }
0x126b   :  { %1371 = vrot.lane.b32.xlu1 %v1369_v10, %s2822_s4 }
0x12d3   :  { %v1345_v16 = vpop.permute.xlu0 %1344 }
0x12d4   :  { %v3262_v17 = vadd.f32 %v1345_v16, %v1337_v15 }
0x12d6   :  { %2621 = vtanh.f32 %v3262_v17  ;;  %v1500_v5 = vrot.slane %v3262_v17, 6  ;;  %v2501_v17 = vld [vmem:[#allocation11 + $0x28] sm:$0xff]  }
0x12dd   :  { %v1372_v20 = vpop.permute.xlu1 %1371 }
0x12de   :  { %v3266_v22 = vadd.f32 %v1372_v20, %v1364_v19 }
0x12e0   :  { %v2622_v23 = vpop.eup %2621  ;;  %2623 = vtanh.f32 %v3266_v22  ;;  %v1527_v10 = vrot.slane %v3266_v22, 2  ;;  %v2502_v22 = vld [vmem:[#allocation11 + $0x78] sm:$0xff]  }
0x12e1   :  { %1350 = vrot.lane.b32.xlu0 %v2622_v23, %s2814_s10  ;;  %v2503_v23 = vld [vmem:[#allocation11 + $0x30] sm:$0xff]  }
0x12ea   :  { %v2624_v26 = vpop.eup %2623 }
0x12eb   :  { %1377 = vrot.lane.b32.xlu1 %v2624_v26, %s2814_s10 }
0x1353   :  { %v1351_v21 = vpop.permute.xlu0 %1350 }
0x1354   :  { %v3271_v28 = vmul.f32 %v2618_v3, %v1351_v21 }
0x1356   :  { %v1391_v29 = vpack.c.bf16 %v3271_v28, %v3271_v28 }
0x1358   :  { %v1393_v32 = vrot.slane %v1391_v29, 2 }
0x135a   :  { %1394 = vrot.lane.b32.xlu0 %v1393_v32, %s2822_s4 }
0x135d   :  { %v1378_v33 = vpop.permute.xlu1 %1377 }
0x135e   :  { %v3276_v31 = vmul.f32 %v2620_v8, %v1378_v33 }
0x1360   :  { %v1443_v35 = vpack.c.bf16 %v3276_v31, %v3276_v31 }
0x1362   :  { %v1445_v36 = vrot.slane %v1443_v35, 1 }
0x1364   :  { %1446 = vrot.lane.b32.xlu1 %v1445_v36, %s2822_s4 }
0x13cc   :  { %v1395_v38 = vpop.permute.xlu0 %1394 }
0x13cd   :  { %2331 = vmatmul.mubr.msk.bf16.vlgmr.msra.gmra.mrb[28].mxu1 %vm120_vm1, %v1395_v38 }
0x13ce   :  { %2358 = vmatprep.mubr.msk.bf16.mxu1 %vm2821_vm0, %v2819_v0 }
0x13d6   :  { %v1447_v39 = vpop.permute.xlu1 %1446 }
0x13d7   :  { %2339 = vmatmul.mubr.msk.bf16.vlgmr.msra.gmra.mrb[32].mxu0 %vm120_vm1, %v1447_v39 }
0x13d8   :  { %2378 = vmatprep.mubr.msk.bf16.mxu0 %vm2821_vm0, %v2819_v0 }
0x14a0   :  { %v1433_v41 = vpop.f32.mrb[28].mxu1 }
0x14a1   :  { %v1440_v42 = vrot.slane %v1433_v41, 2  ;;  %v2332_v4 = vpop.f32.mrb[29].mxu1 }
0x14a2   :  { %v1436_v43 = vpop.f32.mrb[30].mxu1 }
0x14a3   :  { %v1442_v46 = vadd.f32 %v1440_v42, %v3017_v27  ;;  %v2333_v7 = vpop.f32.mrb[31].mxu1 }
0x14a5   :  { %2625 = vtanh.f32 %v1442_v46  ;;  %v2088_v55 = vmul.f32 -1.442695, %v1442_v46 }
0x14aa   :  { %v1485_v45 = vpop.f32.mrb[32].mxu0 }
0x14ab   :  { %v1491_v48 = vadd.f32 %v1485_v45, %v3015_v24  ;;  %v2340_v50 = vpop.f32.mrb[33].mxu0 }
0x14ac   :  { %v1488_v49 = vpop.f32.mrb[34].mxu0 }
0x14ad   :  { %2627 = vtanh.f32 %v1491_v48  ;;  %v2341_v11 = vpop.f32.mrb[35].mxu0  ;;  %v2089_v56 = vmul.f32 -1.442695, %v1491_v48 }
0x14ae   :  { %2629 = vpow2.f32 %v2088_v55 }
0x14af   :  { %v2626_v52 = vpop.eup %2625  ;;  %2631 = vpow2.f32 %v2089_v56 }
0x14b0   :  { %1504 = vrot.lane.b32.xlu0 %v2626_v52, %s2814_s10  ;;  %v2505_v52 = vld [vmem:[#allocation11 + $0x80] sm:$0xff]  }
0x14b7   :  { %v2628_v54 = vpop.eup %2627 }
0x14b8   :  { %1531 = vrot.lane.b32.xlu1 %v2628_v54, %s2814_s10  ;;  %v2630_v27 = vpop.eup %2629 }
0x14b9   :  { %v1495_v12 = vadd.f32 1.0, %v2630_v27  ;;  %v2632_v58 = vpop.eup %2631 }
0x14ba   :  { %v1522_v59 = vadd.f32 1.0, %v2632_v58 }
0x14bb   :  { %2633 = vrcp.f32 %v1495_v12 }
0x14bc   :  { %2635 = vrcp.f32 %v1522_v59  ;;  %v2506_v59 = vld [vmem:[#allocation11 + $0x88] sm:$0xff]  }
0x14c5   :  { %v3291_v24 = vpop.eup %2633 }
0x14c6   :  { %v3295_v63 = vpop.eup %2635  ;;  %v1502_v6 = vmul.f32 %v3291_v24, %v1500_v5 }
0x14c7   :  { %v1529_v13 = vmul.f32 %v3295_v63, %v1527_v10 }
0x1522   :  { %v1505_v60 = vpop.permute.xlu0 %1504 }
0x1523   :  { %v1507_v61 = vmul.f32 %v3291_v24, %v1505_v60  ;;  %v2508_v60 = vld [vmem:[#allocation11 + $0x98] sm:$0xff]  }
0x1525   :  { %1509 = vrot.lane.b32.xlu0 %v1507_v61, %s2822_s4  ;;  %v2509_v61 = vld [vmem:[#allocation11 + $0xa0] sm:$0xff]  }
0x152a   :  { %v1532_v1 = vpop.permute.xlu1 %1531 }
0x152b   :  { %v1534_v3 = vmul.f32 %v3295_v63, %v1532_v1  ;;  %v2511_v1 = vld [vmem:[#allocation11 + $0xb0] sm:$0xff]  }
0x152d   :  { %1536 = vrot.lane.b32.xlu1 %v1534_v3, %s2822_s4  ;;  %v1560_v3 = vadd.s32 8, %v3006_v14  ;;  %v1942_v14 = vld [vmem:[#allocation12 + $0x18] sm:$0xff] }
0x152f   :  { %vm1575_vm15 = vcmp.lt.s32.totalorder %v1560_v3, 14 }
0x1597   :  { %v1510_v8 = vpop.permute.xlu0 %1509 }
0x1598   :  { %v1512_v9 = vadd.f32 %v1510_v8, %v1502_v6  ;;  %v2512_v8 = vld [vmem:[#allocation11 + $0xb8] sm:$0xff]  }
0x159a   :  { %2637 = vtanh.f32 %v1512_v9 }
0x159f   :  { %v1537_v15 = vpop.permute.xlu1 %1536 }
0x15a0   :  { %v1539_v16 = vadd.f32 %v1537_v15, %v1529_v13  ;;  %v1939_v15 = vld [vmem:[#allocation12] sm:$0xff] }
0x15a2   :  { %2639 = vtanh.f32 %v1539_v16  ;;  %v1940_v16 = vld [vmem:[#allocation12 + $0x8] sm:$0xff] }
0x15a4   :  { %v2638_v18 = vpop.eup %2637 }
0x15a5   :  { %1515 = vrot.lane.b32.xlu0 %v2638_v18, %s2814_s10  ;;  %v1941_v18 = vld [vmem:[#allocation12 + $0x10] sm:$0xff] }
0x15a9   :  { %375 = vrot.lane.b32.xlu0 %v3035_v62, %s2814_s10  ;;  %v2489_v62 = vld [vmem:[#allocation11 + $0x40] sm:$0xff]  }
0x15aa   :  { %2343 = vmatpush3.bf16.msra.mxu1 %v2489_v62  ;;  %v2438_v62 = vpack.c.bf16 %v1940_v16, %v1939_v15 }
0x15ab   :  { %2344 = vmatprep.subr.bf16.mxu1 %v2819_v0 }
0x15ac   :  { %v2640_v19 = vpop.eup %2639 }
0x15ad   :  { %1542 = vrot.lane.b32.xlu1 %v2640_v19, %s2814_s10  ;;  %544 = vrot.lane.b32.xlu0 %v3075_v53, %s2814_s10  ;;  %v2491_v53 = vld [vmem:[#allocation11] sm:$0xff]   ;;  %v2825_v19 = vmov 0.0|0.0  }
0x15ae   :  { %2363 = vmatpush3.bf16.msra.mxu0 %v2491_v53  ;;  %v2441_v53 = vpack.c.bf16 %v1942_v14, %v1941_v18 }
0x15af   :  { %2364 = vmatprep.subr.bf16.mxu0 %v2819_v0 }
0x15b1   :  { %381 = vrot.lane.b32.xlu1 %v3040_v2, %s2823_s20  ;;  %714 = vrot.lane.b32.xlu0 %v3115_v47, %s2814_s10  ;;  %v2490_v2 = vld [vmem:[#allocation11 + $0x48] sm:$0xff]   ;;  %v2492_v47 = vld [vmem:[#allocation11 + $0x50] sm:$0xff]  }
0x15b2   :  { %2345 = vmatpush3.bf16.msra.mxu1 %v2490_v2  ;;  %v1944_v2 = vld [vmem:[#allocation12 + $0x28] sm:$0xff] }
0x15b3   :  { %2346 = vmatprep.subr.bf16.mxu1 %v2819_v0 }
0x15b5   :  { %550 = vrot.lane.b32.xlu1 %v3080_v57, %s2823_s20  ;;  %881 = vrot.lane.b32.xlu0 %v3155_v40, %s2814_s10  ;;  %v2493_v57 = vld [vmem:[#allocation11 + $0x8] sm:$0xff]   ;;  %v2494_v40 = vld [vmem:[#allocation11 + $0x58] sm:$0xff]  }
0x15b6   :  { %2365 = vmatpush3.bf16.msra.mxu0 %v2493_v57  ;;  %2347 = vmatpush3.bf16.msra.mxu1 %v2492_v47  ;;  %v1945_v47 = vld [vmem:[#allocation12 + $0x30] sm:$0xff] }
0x15b7   :  { %2366 = vmatprep.subr.bf16.mxu0 %v2819_v0  ;;  %2348 = vmatprep.subr.bf16.mxu1 %v2819_v0 }
0x15b9   :  { %720 = vrot.lane.b32.xlu1 %v3120_v51, %s2823_s20  ;;  %1047 = vrot.lane.b32.xlu0 %v3195_v34, %s2814_s10  ;;  %v2495_v51 = vld [vmem:[#allocation11 + $0x10] sm:$0xff]   ;;  %v2497_v34 = vld [vmem:[#allocation11 + $0x18] sm:$0xff]  }
0x15ba   :  { %2367 = vmatpush3.bf16.msra.mxu0 %v2495_v51  ;;  %2349 = vmatpush3.bf16.msra.mxu1 %v2494_v40  ;;  %v1946_v51 = vld [vmem:[#allocation12 + $0x38] sm:$0xff] }
0x15bb   :  { %2368 = vmatprep.subr.bf16.mxu0 %v2819_v0  ;;  %2350 = vmatprep.subr.bf16.mxu1 %v2819_v0  ;;  %v2447_v40 = vpack.c.bf16 %v1946_v51, %v1945_v47 }
0x15bd   :  { %887 = vrot.lane.b32.xlu1 %v3160_v44, %s2823_s20  ;;  %1214 = vrot.lane.b32.xlu0 %v3235_v25, %s2814_s10  ;;  %v2496_v44 = vld [vmem:[#allocation11 + $0x60] sm:$0xff]  }
0x15be   :  { %2351 = vmatpush3.bf16.msra.mxu1 %v2496_v44  ;;  %2369 = vmatpush3.bf16.msra.mxu0 %v2497_v34  ;;  %v2499_v25 = vld [vmem:[#allocation11 + $0x20] sm:$0xff]   ;;  %v1948_v34 = vld [vmem:[#allocation12 + $0x48] sm:$0xff] }
0x15bf   :  { %2352 = vmatprep.subr.bf16.mxu1 %v2819_v0  ;;  %2370 = vmatprep.subr.bf16.mxu0 %v2819_v0  ;;  %v1947_v44 = vld [vmem:[#allocation12 + $0x40] sm:$0xff] }
0x15c1   :  { %1052 = vrot.lane.b32.xlu1 %v3200_v37, %s2823_s20  ;;  %1382 = vrot.lane.b32.xlu0 %v3271_v28, %s2814_s10  ;;  %v2498_v37 = vld [vmem:[#allocation11 + $0x68] sm:$0xff]   ;;  %v2504_v28 = vld [vmem:[#allocation11 + $0x38] sm:$0xff]  }
0x15c2   :  { %2353 = vmatpush3.bf16.msra.mxu1 %v2498_v37  ;;  %2371 = vmatpush3.bf16.msra.mxu0 %v2499_v25  ;;  %v2450_v37 = vpack.c.bf16 %v1948_v34, %v1947_v44  ;;  %v1949_v25 = vld [vmem:[#allocation12 + $0x50] sm:$0xff] }
0x15c3   :  { %2354 = vmatprep.subr.bf16.mxu1 %v2819_v0  ;;  %2372 = vmatprep.subr.bf16.mxu0 %v2819_v0 }
0x15c5   :  { %1219 = vrot.lane.b32.xlu1 %v3240_v30, %s2823_s20  ;;  %v2500_v30 = vld [vmem:[#allocation11 + $0x70] sm:$0xff]  }
0x15c6   :  { %2355 = vmatpush3.bf16.msra.mxu1 %v2500_v30  ;;  %2373 = vmatpush3.bf16.msra.mxu0 %v2501_v17  ;;  %v1950_v30 = vld [vmem:[#allocation12 + $0x58] sm:$0xff] }
0x15c7   :  { %2356 = vmatprep.subr.bf16.mxu1 %v2819_v0  ;;  %2374 = vmatprep.subr.bf16.mxu0 %v2819_v0  ;;  %v2453_v17 = vpack.c.bf16 %v1950_v30, %v1949_v25 }
0x15c9   :  { %1387 = vrot.lane.b32.xlu1 %v3276_v31, %s2823_s20 }
0x15ca   :  { %2357 = vmatpush3.bf16.msra.mxu1 %v2502_v22  ;;  %2375 = vmatpush3.bf16.msra.mxu0 %v2503_v23  ;;  %v1952_v22 = vld [vmem:[#allocation12 + $0x68] sm:$0xff] }
0x15cb   :  { %2376 = vmatprep.subr.bf16.mxu0 %v2819_v0  ;;  %2382 = vmatprep.subr.bf16.mxu1 %v2819_v0 }
0x15ce   :  { %2377 = vmatpush3.bf16.msra.mxu0 %v2504_v28 }
0x15cf   :  { %2437 = vmatprep.subr.bf16.mxu0 %v2825_v19 }
0x1617   :  { %v1516_v20 = vpop.permute.xlu0 %1515 }
0x1618   :  { %v1518_v26 = vmul.f32 %v3291_v24, %v1516_v20  ;;  %v2507_v24 = vld [vmem:[#allocation11 + $0x90] sm:$0xff]   ;;  %v1951_v20 = vld [vmem:[#allocation12 + $0x60] sm:$0xff] }
0x1619   :  { %v2456_v23 = vpack.c.bf16 %v1952_v22, %v1951_v20 }
0x161a   :  { %1547 = vrot.lane.b32.xlu0 %v1518_v26, %s2814_s10  ;;  %v1953_v26 = vld [vmem:[#allocation12 + $0x70] sm:$0xff] }
0x161b   :  { %v376_v21 = vpop.permute.xlu0 %375 }
0x161c   :  { %379 = vst.msk [vmem:[#allocation2] sm:$0x3] %vm378_vm2, %v376_v21  ;;  %v1954_v21 = vld [vmem:[#allocation12 + $0x78] sm:$0xff] }
0x161d   :  { %v2459_v28 = vpack.c.bf16 %v1954_v21, %v1953_v26 }
0x161f   :  { %v1543_v29 = vpop.permute.xlu1 %1542  ;;  %v545_v32 = vpop.permute.xlu0 %544 }
0x1620   :  { %v1545_v33 = vmul.f32 %v3295_v63, %v1543_v29  ;;  %548 = vst.msk [vmem:[#allocation2] sm:$0xc] %vm547_vm3, %v545_v32  ;;  %v2510_v63 = vld [vmem:[#allocation11 + $0xa8] sm:$0xff]  }
0x1622   :  { %1552 = vrot.lane.b32.xlu1 %v1545_v33, %s2823_s20 }
0x1623   :  { %v382_v31 = vpop.permute.xlu1 %381  ;;  %v715_v35 = vpop.permute.xlu0 %714 }
0x1624   :  { %385 = vst.msk [vmem:[#allocation2 + $0x8] sm:$0xc0] %vm384_vm4, %v382_v31 }
0x1625   :  { %718 = vst.msk [vmem:[#allocation2] sm:$0x30] %vm717_vm5, %v715_v35 }
0x1627   :  { %v551_v36 = vpop.permute.xlu1 %550  ;;  %v882_v38 = vpop.permute.xlu0 %881 }
0x1628   :  { %554 = vst.msk [vmem:[#allocation2 + $0x8] sm:$0x30] %vm553_vm6, %v551_v36 }
0x1629   :  { %885 = vst.msk [vmem:[#allocation2] sm:$0xc0] %vm884_vm7, %v882_v38 }
0x162b   :  { %v721_v39 = vpop.permute.xlu1 %720  ;;  %v1048_v41 = vpop.permute.xlu0 %1047 }
0x162c   :  { %724 = vst.msk [vmem:[#allocation2 + $0x8] sm:$0xc] %vm723_vm8, %v721_v39 }
0x162f   :  { %v888_v42 = vpop.permute.xlu1 %887  ;;  %v1215_v4 = vpop.permute.xlu0 %1214 }
0x1630   :  { %891 = vst.msk [vmem:[#allocation2 + $0x8] sm:$0x3] %vm890_vm9, %v888_v42 }
0x1631   :  { %1217 = vst.msk [vmem:[#allocation2 + $0x8] sm:$0xc] %vm547_vm3, %v1215_v4 }
0x1632   :  { %1050 = vst.msk [vmem:[#allocation2 + $0x8] sm:$0x3] %vm378_vm2, %v1048_v41 }
0x1633   :  { %v1053_v43 = vpop.permute.xlu1 %1052  ;;  %v1383_v46 = vpop.permute.xlu0 %1382 }
0x1634   :  { %1055 = vst.msk [vmem:[#allocation2] sm:$0xc0] %vm384_vm4, %v1053_v43  ;;  %v2120_v43 = vld [vmem:[%s3409_s6] ss:$0 sm:$0xff] }
0x1635   :  { %1385 = vst.msk [vmem:[#allocation2 + $0x8] sm:$0x30] %vm717_vm5, %v1383_v46 }
0x1637   :  { %v1220_v7 = vpop.permute.xlu1 %1219 }
0x1638   :  { %1222 = vst.msk [vmem:[#allocation2] sm:$0x30] %vm553_vm6, %v1220_v7 }
0x163b   :  { %v1388_v45 = vpop.permute.xlu1 %1387 }
0x163c   :  { %1390 = vst.msk [vmem:[#allocation2] sm:$0xc] %vm723_vm8, %v1388_v45 }
0x168c   :  { %v1548_v48 = vpop.permute.xlu0 %1547 }
0x168d   :  { %1550 = vst.msk [vmem:[#allocation2 + $0x8] sm:$0xc0] %vm884_vm7, %v1548_v48 }
0x1694   :  { %v1553_v50 = vpop.permute.xlu1 %1552  ;;  %v1557_v49 = vld [vmem:[#allocation2 + $0x8] sm:$0xff] }
0x1695   :  { %1555 = vst.msk [vmem:[#allocation2] sm:$0x3] %vm890_vm9, %v1553_v50  ;;  %v1564_v55 = vrot.slane %v1557_v49, 6  ;;  %v1577_v6 = vrot.slane %v1557_v49, 2 }
0x169c   :  { %v1556_v11 = vld [vmem:[#allocation2] sm:$0xff] }
0x169d   :  { %v1563_v54 = vrot.slane %v1556_v11, 6  ;;  %v1636_v56 = vpack.c.bf16 %v1557_v49, %v1556_v11  ;;  %v1576_v5 = vrot.slane %v1556_v11, 2 }
0x169f   :  { %2359 = vmatmul.mubr.bf16.vlgmr.msra.gmra.mrb[32].mxu1 %v1636_v56  ;;  %v1566_v27 = vsel %vm1565_vm11, %v1563_v54, %v1564_v55  ;;  %v1567_v12 = vsel %vm1565_vm11, %v1564_v55, %v1563_v54  ;;  %v1579_v9 = vsel %vm1578_vm14, %v1576_v5, %v1577_v6  ;;  %v1580_v10 = vsel %vm1578_vm14, %v1577_v6, %v1576_v5  ;;  %v2121_v6 = vld [vmem:[%s3411_s8] ss:$0 sm:$0xff] }
0x16a0   :  { %2383 = vmatpush3.bf16.msra.mxu1 %v2505_v52  ;;  %v2107_v58 = vpack.c.bf16 %v1566_v27, %v1567_v12  ;;  %2398 = vmatprep.mubr.msk.bf16.mxu1 %vm2821_vm0, %v2819_v0  ;;  %v2118_v13 = vpack.c.bf16 %v1580_v10, %v1579_v9 }
0x16a1   :  { %2384 = vmatprep.subr.bf16.mxu1 %v2819_v0 }
0x16a2   :  { %2379 = vmatmul.mubr.msk.bf16.vlgmr.msra.gmra.mrb[36].mxu0 %vm2106_vm13, %v2107_v58 }
0x16a3   :  { %2434 = vmatprep.mubr.msk.f32.mxu0 %vm2821_vm0, %v2819_v0  ;;  %vm2117_vm0 = vmpackc.low %vm1575_vm15, %vm2824_vm12  ;;  %2439 = vmatpush3.bf16.msra.mxu0 %v2438_v62 }
0x16a4   :  { %2385 = vmatpush3.bf16.msra.mxu1 %v2506_v59  ;;  %2440 = vmatprep.subr.bf16.mxu0 %v2825_v19 }
0x16a5   :  { %2386 = vmatprep.subr.bf16.mxu1 %v2819_v0 }
0x16a7   :  { %2442 = vmatpush3.bf16.msra.mxu0 %v2441_v53 }
0x16a8   :  { %2387 = vmatpush3.bf16.msra.mxu1 %v2507_v24  ;;  %2443 = vmatprep.subr.bf16.mxu0 %v2825_v19 }
0x16a9   :  { %2388 = vmatprep.subr.bf16.mxu1 %v2819_v0 }
0x16ac   :  { %2389 = vmatpush3.bf16.msra.mxu1 %v2508_v60 }
0x16ad   :  { %2390 = vmatprep.subr.bf16.mxu1 %v2819_v0 }
0x16b0   :  { %2391 = vmatpush3.bf16.msra.mxu1 %v2509_v61 }
0x16b1   :  { %2392 = vmatprep.subr.bf16.mxu1 %v2819_v0 }
0x16b4   :  { %2393 = vmatpush3.bf16.msra.mxu1 %v2510_v63 }
0x16b5   :  { %2394 = vmatprep.subr.bf16.mxu1 %v2819_v0 }
0x16b8   :  { %2395 = vmatpush3.bf16.msra.mxu1 %v2511_v1 }
0x16b9   :  { %2396 = vmatprep.subr.bf16.mxu1 %v2819_v0  ;;  %v1943_v0 = vld [vmem:[#allocation12 + $0x20] sm:$0xff] }
0x16ba   :  { %v2444_v57 = vpack.c.bf16 %v1944_v2, %v1943_v0 }
0x16bc   :  { %2397 = vmatpush3.bf16.msra.mxu1 %v2512_v8  ;;  %2445 = vmatpush3.bf16.msra.mxu0 %v2444_v57 }
0x16bd   :  { %2446 = vmatprep.subr.bf16.mxu0 %v2825_v19 }
0x16bf   :  { %2399 = vmatmul.mubr.msk.bf16.vlgmr.msra.gmra.mrb[36].mxu1 %vm2117_vm0, %v2118_v13 }
0x16c0   :  { %2448 = vmatpush3.bf16.msra.mxu0 %v2447_v40 }
0x16c1   :  { %2449 = vmatprep.subr.bf16.mxu0 %v2825_v19 }
0x16c4   :  { %2451 = vmatpush3.bf16.msra.mxu0 %v2450_v37 }
0x16c5   :  { %2452 = vmatprep.subr.bf16.mxu0 %v2825_v19 }
0x16c8   :  { %2454 = vmatpush3.bf16.msra.mxu0 %v2453_v17 }
0x16c9   :  { %2455 = vmatprep.subr.bf16.mxu0 %v2825_v19 }
0x16cc   :  { %2457 = vmatpush3.bf16.msra.mxu0 %v2456_v23 }
0x16cd   :  { %2458 = vmatprep.subr.bf16.mxu0 %v2825_v19 }
0x16d0   :  { %2460 = vmatpush3.bf16.msra.mxu0 %v2459_v28 }
0x1772   :  { %v1719_v29 = vpop.f32.mrb[32].mxu1 }
0x1773   :  { %v2360_v32 = vpop.f32.mrb[33].mxu1 }
0x1774   :  { %v1722_v33 = vpop.f32.mrb[34].mxu1 }
0x1775   :  { %v2361_v31 = vpop.f32.mrb[35].mxu1  ;;  %v1808_v35 = vpop.f32.mrb[36].mxu0 }
0x1776   :  { %v1809_v36 = vadd.f32 %v1808_v35, %v1719_v29  ;;  %v2380_v38 = vpop.f32.mrb[37].mxu0 }
0x1777   :  { %v1811_v39 = vpop.f32.mrb[38].mxu0 }
0x1778   :  { %v1812_v41 = vadd.f32 %v1811_v39, %v1722_v33  ;;  %v2381_v42 = vpop.f32.mrb[39].mxu0 }
0x1792   :  { %v1898_v4 = vpop.f32.mrb[36].mxu1 }
0x1793   :  { %v1905_v46 = vadd.f32 %v1898_v4, %v1809_v36  ;;  %v2400_v7 = vpop.f32.mrb[37].mxu1 }
0x1794   :  { %v1901_v45 = vpop.f32.mrb[38].mxu1 }
0x1795   :  { %v1914_v48 = vadd.f32 %v2120_v43, %v1905_v46  ;;  %v1906_v50 = vadd.f32 %v1901_v45, %v1812_v41  ;;  %v2401_v49 = vpop.f32.mrb[39].mxu1 }
0x1797   :  { %v1916_v11 = vmax.f32 %v1914_v48, 0.0  ;;  %v1915_v54 = vadd.f32 %v2120_v43, %v1906_v50 }
0x1799   :  { %v1919_v52 = vrot.slane %v1916_v11, 2  ;;  %v1922_v56 = vrot.slane %v1916_v11, 4  ;;  %v1925_v12 = vrot.slane %v1916_v11, 6  ;;  %v1917_v58 = vmax.f32 %v1915_v54, 0.0 }
0x179b   :  { %v1921_v55 = vmax.f32 %v1916_v11, %v1919_v52  ;;  %v1930_v60 = vrot.slane %v1917_v58, 2  ;;  %v1933_v61 = vrot.slane %v1917_v58, 4  ;;  %v1936_v3 = vrot.slane %v1917_v58, 6 }
0x179d   :  { %v1924_v27 = vmax.f32 %v1921_v55, %v1922_v56 }
0x179f   :  { %v1927_v59 = vmax.f32 %v1924_v27, %v1925_v12 }
0x17a1   :  { %v1928_v24 = vmax.f32 %v1927_v59, %v1917_v58 }
0x17a3   :  { %v1932_v63 = vmax.f32 %v1928_v24, %v1930_v60 }
0x17a5   :  { %v1935_v1 = vmax.f32 %v1932_v63, %v1933_v61 }
0x17a7   :  { %v1938_v5 = vmax.f32 %v1935_v1, %v1936_v3 }
0x17a9   :  { %2435 = vmatmul.mubr.f32.vlgmr.msra.gmra.mrb[40].mxu0 %v1938_v5 }
0x187c   :  { %v2028_v8 = vpop.f32.mrb[40].mxu0 }
0x187d   :  { %v2029_v9 = vadd.f32 %v2121_v6, %v2028_v8  ;;  %v2436_v10 = vpop.f32.mrb[41].mxu0 }
0x187f   :  { %2032 = vst [vmem:[#allocation14] sm:$0x3] %v2029_v9 }
0x1880   :  { %2788 = shalt.err (!%p2785_p10)
}
0x1881   :  { %s2789_s29 = scalar_lea.hbm %s3412_s9, 32 }
0x1882   :  { %p2790_p11 = scmp.ne.s32.totalorder %s3412_s9, %s2789_s29  ;;  %p2793_p12 = scmp.lt.u32.totalorder %s2789_s29, %s3412_s9 }
0x1884   :  { %p2795_p13 = pnand %p2793_p12, %p2790_p11 }
0x1886   :  { %2798 = shalt.err (!%p2795_p13)
}
0x1887   :  { %2042 = dma.vmem_to_hbm [thread:$0]  %s2040_s27, 32, %s3412_s9, [#allocation5]  }
0x1888   :  { %2807 = dma.done.wait [#allocation5], 32  }
0x1889   :  { %2808 = vsyncadd [#allocation5], 4294967264 }
0x188a   :  { %2046 = vsyncpa [#allocation4], 1 }
0x188b   :  { %2047 = vsyncpa [#allocation7], 1 }
0x188c   :  { %2048 = vsyncpa [#allocation10], 1 }
0x188d   :  { %2049 = vsyncpa [#allocation13], 1 }
0x188e   :  { %2050 = vsyncpa [#allocation5], 1 }

</bundles_post_ra>
